<compile_context>
chip_gen: v6e
topology: v6e:2x2x1
jax: 0.10.0
libtpu: 0.0.40
codegen_flags: <defaults>
</compile_context>

<pallas_src>
import math
import functools

import numpy as np
import jax
import jax.numpy as jnp
from jax import lax
from jax.experimental import pallas as pl
from jax.experimental.pallas import tpu as pltpu


def _round_up(x, m):
    return ((x + m - 1) // m) * m


# --------------------------- Pallas kernel bodies ---------------------------

def _make_conv_stats_kernel(kh, kw, Wp, T, Cin, Cout):
    """Fused (im2col-free) direct conv + per-channel sum / sum-of-squares."""

    def kernel(xf_ref, w_ref, m_ref, o_ref, s_ref, q_ref):
        # xf_ref: (1, Lf, Cin)        flattened padded NHWC input for one image
        # w_ref : (kh*kw*Cin, Cout)   weight rows ordered (ki, kj, cin)
        # m_ref : (T, 1)              1.0 on rows that are real conv outputs
        # o_ref : (1, T, Cout)        conv output (flat spatial, channels-last)
        # s_ref, q_ref: (1, Cout)     running sum / sum-of-squares accumulators
        x_all = xf_ref[0]            # (Lf, Cin)
        w_all = w_ref[...]           # (kh*kw*Cin, Cout)

        acc = None
        for ki in range(kh):
            for kj in range(kw):
                d = ki * Wp + kj                                    # static offset
                xs = x_all[d:d + T, :]                              # (T, Cin)
                k0 = (ki * kw + kj) * Cin
                wk = w_all[k0:k0 + Cin, :]                          # (Cin, Cout)
                part = jnp.dot(xs, wk, preferred_element_type=jnp.float32)
                acc = part if acc is None else acc + part
        o_ref[0] = acc

        @pl.when(pl.program_id(0) == 0)
        def _():
            s_ref[...] = jnp.zeros_like(s_ref)
            q_ref[...] = jnp.zeros_like(q_ref)

        am = acc * m_ref[...]                       # mask wrap-around rows
        s_ref[...] += jnp.sum(am, axis=0, keepdims=True)
        q_ref[...] += jnp.sum(acc * am, axis=0, keepdims=True)

    return kernel


def _bn_gelu_kernel(x_ref, scale_ref, shift_ref, o_ref):
    # Fused affine batch-norm + exact (erf-based) GELU, matching nn.GELU().
    y = x_ref[...] * scale_ref[...] + shift_ref[...]
    o_ref[...] = 0.5 * y * (1.0 + lax.erf(y * (1.0 / math.sqrt(2.0))))


# ------------------------------ host wrappers -------------------------------

def conv_stats_pallas(xf, w2, mask, *, kh, kw, Wp, T, Cin, Cout):
    """xf: [N, Lf, Cin], w2: [kh*kw*Cin, Cout], mask: [T, 1] ->
       (conv_flat [N, T, Cout], sum [1, Cout], sumsq [1, Cout])."""
    N, Lf, _ = xf.shape
    K = kh * kw * Cin
    kernel = _make_conv_stats_kernel(kh, kw, Wp, T, Cin, Cout)
    out_shapes = (jax.ShapeDtypeStruct((N, T, Cout), jnp.float32),
                  jax.ShapeDtypeStruct((1, Cout), jnp.float32),
                  jax.ShapeDtypeStruct((1, Cout), jnp.float32))
    return pl.pallas_call(
        kernel,
        out_shape=out_shapes,
        grid_spec=pltpu.PrefetchScalarGridSpec(
            num_scalar_prefetch=0,
            grid=(N,),
            in_specs=[
                pl.BlockSpec((1, Lf, Cin), lambda n: (n, 0, 0)),
                pl.BlockSpec((K, Cout), lambda n: (0, 0)),     # resident weights
                pl.BlockSpec((T, 1), lambda n: (0, 0)),        # resident mask
            ],
            out_specs=(
                pl.BlockSpec((1, T, Cout), lambda n: (n, 0, 0)),
                pl.BlockSpec((1, Cout), lambda n: (0, 0)),     # accumulators:
                pl.BlockSpec((1, Cout), lambda n: (0, 0)),     # same block every step
            ),
        ),
        # grid axis carries the stats accumulators -> must be sequential.
        compiler_params=pltpu.CompilerParams(dimension_semantics=("arbitrary",)),
    )(xf, w2, mask)


def bn_gelu_pallas(x2d, scale_row, shift_row, *, tm=1024):
    """x2d: [M, C] f32, scale_row/shift_row: [1, C] -> [M, C] f32 (in place)."""
    M, C = x2d.shape
    tm_eff = min(tm, M)
    if tm_eff < M:
        tm_eff = max(8, (tm_eff // 8) * 8)
    grid = (pl.cdiv(M, tm_eff),)
    return pl.pallas_call(
        _bn_gelu_kernel,
        out_shape=jax.ShapeDtypeStruct((M, C), jnp.float32),
        grid_spec=pltpu.PrefetchScalarGridSpec(
            num_scalar_prefetch=0,
            grid=grid,
            in_specs=[
                pl.BlockSpec((tm_eff, C), lambda i: (i, 0)),
                pl.BlockSpec((1, C), lambda i: (0, 0)),
                pl.BlockSpec((1, C), lambda i: (0, 0)),
            ],
            out_specs=pl.BlockSpec((tm_eff, C), lambda i: (i, 0)),
        ),
        input_output_aliases={0: 0},          # write activation over conv_out
        compiler_params=pltpu.CompilerParams(dimension_semantics=("parallel",)),
    )(x2d, scale_row, shift_row)


@functools.partial(jax.jit, static_argnames=("kernel_size", "stride", "padding", "eps"))
def conv_bn_layer_forward(x_nchw, conv_weight, bn_gamma, bn_beta, *,
                          kernel_size=3, stride=1, padding=0, eps=1e-5):
    """Forward of ConvBNLayer: Conv2d(no bias, groups=1) -> BatchNorm2d(train) -> GELU.

    x_nchw:      [N, Cin, H, W]   float32
    conv_weight: [Cout, Cin, kh, kw]
    bn_gamma/bn_beta: [Cout]
    returns      [N, Cout, Ho, Wo]
    """
    N, Cin, H, W = x_nchw.shape
    Cout = conv_weight.shape[0]
    kh = kw = kernel_size
    Hp, Wp = H + 2 * padding, W + 2 * padding
    Ho = (Hp - kh) // stride + 1
    Wo = (Wp - kw) // stride + 1

    # ---- layout prep: one small pass over the input (no 9x im2col copy) ------
    x_nhwc = jnp.transpose(x_nchw, (0, 2, 3, 1))
    if padding > 0:
        x_nhwc = jnp.pad(x_nhwc,
                         ((0, 0), (padding, padding), (padding, padding), (0, 0)))
    xf = x_nhwc.reshape(N, Hp * Wp, Cin)

    # Flat-conv bookkeeping (static, traced as constants).
    T_exact = (Ho - 1) * stride * Wp + (Wo - 1) * stride + 1
    T = _round_up(T_exact, 16)                   # sublane/lane-friendly row count
    d_max = (kh - 1) * Wp + (kw - 1)
    Lf = _round_up(max(Hp * Wp, T + d_max), 8)
    if Lf > Hp * Wp:
        xf = jnp.pad(xf, ((0, 0), (0, Lf - Hp * Wp), (0, 0)))

    tt = np.arange(T)
    row, col = tt // Wp, tt % Wp
    valid = ((row % stride == 0) & (row // stride < Ho) &
             (col % stride == 0) & (col // stride < Wo))
    mask = jnp.asarray(valid.astype(np.float32)).reshape(T, 1)
    valid_idx = jnp.asarray(np.nonzero(valid)[0].astype(np.int32))   # (Ho*Wo,)

    # weight (Cout, Cin, kh, kw) -> (kh*kw*Cin, Cout), row index = (ki*kw+kj)*Cin+cin
    w2 = jnp.transpose(conv_weight, (2, 3, 1, 0)).reshape(kh * kw * Cin, Cout)

    # ---- pass 1: fused conv + BN batch statistics ----------------------------
    conv_flat, ssum, ssq = conv_stats_pallas(
        xf, w2, mask, kh=kh, kw=kw, Wp=Wp, T=T, Cin=Cin, Cout=Cout)

    cnt = float(N * Ho * Wo)
    mean = ssum[0] / cnt
    # NOTE: E[x^2]-E[x]^2 accumulated in f32; fine at these scales (reviewer caveat).
    var = jnp.maximum(ssq[0] / cnt - mean * mean, 0.0)          # biased variance
    inv_std = lax.rsqrt(var + eps)
    scale = bn_gamma * inv_std
    shift = bn_beta - mean * scale

    # ---- pass 2: fused BN affine + exact GELU (lane-dense, in place) ---------
    total = N * T * Cout
    if Cout <= 128 and 128 % Cout == 0 and total % 128 == 0:
        lanes = 128
        reps = lanes // Cout
        x2d = conv_flat.reshape(total // lanes, lanes)          # free reshape
        scale_row = jnp.tile(scale, reps).reshape(1, lanes)
        shift_row = jnp.tile(shift, reps).reshape(1, lanes)
    else:
        x2d = conv_flat.reshape(N * T, Cout)
        scale_row = scale.reshape(1, Cout)
        shift_row = shift.reshape(1, Cout)
    act2d = bn_gelu_pallas(x2d, scale_row, shift_row)

    # ---- drop wrap-around rows and restore the NCHW contract -----------------
    # TODO(synk): final gather + NHWC->NCHW transpose is left to XLA (one output
    # pass); keeping NHWC for downstream consumers would remove it entirely.
    act = act2d.reshape(N, T, Cout)
    out_nhwc = jnp.take(act, valid_idx, axis=1).reshape(N, Ho, Wo, Cout)
    return jnp.transpose(out_nhwc, (0, 3, 1, 2))


# ----------------------------------- main -----------------------------------

if __name__ == "__main__":
    key = jax.random.PRNGKey(0)
    k_x, k_w = jax.random.split(key)

    # Module config (defaults of ConvBNLayer): kernel_size=3, stride=1, padding=0,
    # bias=False, groups=1, act=GELU.
    N, Cin, H, W = 2, 4, 16, 16
    Cout, ksz, stride, padding = 8, 3, 1, 0

    x = jax.random.normal(k_x, (N, Cin, H, W), dtype=jnp.float32)
    # Kaiming-normal-ish deterministic init for the conv weight.
    fan_in = Cin * ksz * ksz
    conv_w = jax.random.normal(k_w, (Cout, Cin, ksz, ksz), dtype=jnp.float32) \
             * math.sqrt(2.0 / fan_in)
    # BatchNorm2d default init: gamma=1, beta=0.
    gamma = jnp.ones((Cout,), dtype=jnp.float32)
    beta = jnp.zeros((Cout,), dtype=jnp.float32)

    out = conv_bn_layer_forward(x, conv_w, gamma, beta,
                                kernel_size=ksz, stride=stride, padding=padding)
    out = jax.block_until_ready(out)

    # Reference check (plain JAX): conv -> train-mode BN -> exact GELU.
    ref_conv = lax.conv_general_dilated(
        x, conv_w, window_strides=(stride, stride),
        padding=[(padding, padding), (padding, padding)],
        dimension_numbers=("NCHW", "OIHW", "NCHW"))
    m = jnp.mean(ref_conv, axis=(0, 2, 3), keepdims=True)
    v = jnp.mean((ref_conv - m) ** 2, axis=(0, 2, 3), keepdims=True)
    ref_bn = (ref_conv - m) / jnp.sqrt(v + 1e-5) * gamma[None, :, None, None] \
             + beta[None, :, None, None]
    ref = jax.nn.gelu(ref_bn, approximate=False)

    assert out.shape == (N, Cout, H - ksz + 1, W - ksz + 1), out.shape
    assert jnp.allclose(out, ref, atol=1e-4, rtol=1e-4), \
        float(jnp.max(jnp.abs(out - ref)))

    print("KERNEL_OK")
</pallas_src>

<mosaic_0001>
module attributes {stable_mosaic.version = 11 : i64} {
  func.func @kernel(%arg0: i32, %arg1: memref<1x264x4xf32, #tpu.memory_space<vmem>>, %arg2: memref<36x8xf32, #tpu.memory_space<vmem>>, %arg3: memref<224x1xf32, #tpu.memory_space<vmem>>, %arg4: memref<1x224x8xf32, #tpu.memory_space<vmem>>, %arg5: memref<1x8xf32, #tpu.memory_space<vmem>>, %arg6: memref<1x8xf32, #tpu.memory_space<vmem>>) attributes {dimension_semantics = [#tpu.dimension_semantics<arbitrary>], iteration_bounds = array<i64: 2>, scalar_prefetch = 0 : i64, scratch_operands = 0 : i64, tpu.core_type = #tpu.core_type<tc>, window_params = [{transform_indices = @transform_0, window_bounds = array<i64: 1, 264, 4>}, {pipeline_mode = #tpu.pipeline_mode<synchronous>, transform_indices = @transform_1, window_bounds = array<i64: 36, 8>}, {pipeline_mode = #tpu.pipeline_mode<synchronous>, transform_indices = @transform_2, window_bounds = array<i64: 224, 1>}, {transform_indices = @transform_3, window_bounds = array<i64: 1, 224, 8>}, {pipeline_mode = #tpu.pipeline_mode<synchronous>, transform_indices = @transform_4, window_bounds = array<i64: 1, 8>}, {pipeline_mode = #tpu.pipeline_mode<synchronous>, transform_indices = @transform_5, window_bounds = array<i64: 1, 8>}]} {
    %c0 = arith.constant 0 : index
    %c0_0 = arith.constant 0 : index
    %c0_1 = arith.constant 0 : index
    %0 = vector.load %arg1[%c0, %c0_0, %c0_1] : memref<1x264x4xf32, #tpu.memory_space<vmem>>, vector<1x264x4xf32>
    %1 = vector.shape_cast %0 : vector<1x264x4xf32> to vector<264x4xf32>
    %c0_2 = arith.constant 0 : index
    %c0_3 = arith.constant 0 : index
    %2 = vector.load %arg2[%c0_2, %c0_3] : memref<36x8xf32, #tpu.memory_space<vmem>>, vector<36x8xf32>
    %3 = vector.extract_strided_slice %1 {offsets = [0, 0], sizes = [224, 4], strides = [1, 1]} : vector<264x4xf32> to vector<224x4xf32>
    %4 = vector.extract_strided_slice %2 {offsets = [0, 0], sizes = [4, 8], strides = [1, 1]} : vector<36x8xf32> to vector<4x8xf32>
    %cst = arith.constant dense<0.000000e+00> : vector<224x8xf32>
    %5 = tpu.matmul %3, %4, %cst {dimension_numbers = #tpu.dot_dimension_numbers<[1], [0], [0], [1], [0, 0, 1, 1], [], []>} : vector<224x4xf32>, vector<4x8xf32>, vector<224x8xf32> -> vector<224x8xf32>
    %6 = vector.extract_strided_slice %1 {offsets = [1, 0], sizes = [224, 4], strides = [1, 1]} : vector<264x4xf32> to vector<224x4xf32>
    %7 = vector.extract_strided_slice %2 {offsets = [4, 0], sizes = [4, 8], strides = [1, 1]} : vector<36x8xf32> to vector<4x8xf32>
    %cst_4 = arith.constant dense<0.000000e+00> : vector<224x8xf32>
    %8 = tpu.matmul %6, %7, %cst_4 {dimension_numbers = #tpu.dot_dimension_numbers<[1], [0], [0], [1], [0, 0, 1, 1], [], []>} : vector<224x4xf32>, vector<4x8xf32>, vector<224x8xf32> -> vector<224x8xf32>
    %9 = arith.addf %5, %8 : vector<224x8xf32>
    %10 = vector.extract_strided_slice %1 {offsets = [2, 0], sizes = [224, 4], strides = [1, 1]} : vector<264x4xf32> to vector<224x4xf32>
    %11 = vector.extract_strided_slice %2 {offsets = [8, 0], sizes = [4, 8], strides = [1, 1]} : vector<36x8xf32> to vector<4x8xf32>
    %cst_5 = arith.constant dense<0.000000e+00> : vector<224x8xf32>
    %12 = tpu.matmul %10, %11, %cst_5 {dimension_numbers = #tpu.dot_dimension_numbers<[1], [0], [0], [1], [0, 0, 1, 1], [], []>} : vector<224x4xf32>, vector<4x8xf32>, vector<224x8xf32> -> vector<224x8xf32>
    %13 = arith.addf %9, %12 : vector<224x8xf32>
    %14 = vector.extract_strided_slice %1 {offsets = [16, 0], sizes = [224, 4], strides = [1, 1]} : vector<264x4xf32> to vector<224x4xf32>
    %15 = vector.extract_strided_slice %2 {offsets = [12, 0], sizes = [4, 8], strides = [1, 1]} : vector<36x8xf32> to vector<4x8xf32>
    %cst_6 = arith.constant dense<0.000000e+00> : vector<224x8xf32>
    %16 = tpu.matmul %14, %15, %cst_6 {dimension_numbers = #tpu.dot_dimension_numbers<[1], [0], [0], [1], [0, 0, 1, 1], [], []>} : vector<224x4xf32>, vector<4x8xf32>, vector<224x8xf32> -> vector<224x8xf32>
    %17 = arith.addf %13, %16 : vector<224x8xf32>
    %18 = vector.extract_strided_slice %1 {offsets = [17, 0], sizes = [224, 4], strides = [1, 1]} : vector<264x4xf32> to vector<224x4xf32>
    %19 = vector.extract_strided_slice %2 {offsets = [16, 0], sizes = [4, 8], strides = [1, 1]} : vector<36x8xf32> to vector<4x8xf32>
    %cst_7 = arith.constant dense<0.000000e+00> : vector<224x8xf32>
    %20 = tpu.matmul %18, %19, %cst_7 {dimension_numbers = #tpu.dot_dimension_numbers<[1], [0], [0], [1], [0, 0, 1, 1], [], []>} : vector<224x4xf32>, vector<4x8xf32>, vector<224x8xf32> -> vector<224x8xf32>
    %21 = arith.addf %17, %20 : vector<224x8xf32>
    %22 = vector.extract_strided_slice %1 {offsets = [18, 0], sizes = [224, 4], strides = [1, 1]} : vector<264x4xf32> to vector<224x4xf32>
    %23 = vector.extract_strided_slice %2 {offsets = [20, 0], sizes = [4, 8], strides = [1, 1]} : vector<36x8xf32> to vector<4x8xf32>
    %cst_8 = arith.constant dense<0.000000e+00> : vector<224x8xf32>
    %24 = tpu.matmul %22, %23, %cst_8 {dimension_numbers = #tpu.dot_dimension_numbers<[1], [0], [0], [1], [0, 0, 1, 1], [], []>} : vector<224x4xf32>, vector<4x8xf32>, vector<224x8xf32> -> vector<224x8xf32>
    %25 = arith.addf %21, %24 : vector<224x8xf32>
    %26 = vector.extract_strided_slice %1 {offsets = [32, 0], sizes = [224, 4], strides = [1, 1]} : vector<264x4xf32> to vector<224x4xf32>
    %27 = vector.extract_strided_slice %2 {offsets = [24, 0], sizes = [4, 8], strides = [1, 1]} : vector<36x8xf32> to vector<4x8xf32>
    %cst_9 = arith.constant dense<0.000000e+00> : vector<224x8xf32>
    %28 = tpu.matmul %26, %27, %cst_9 {dimension_numbers = #tpu.dot_dimension_numbers<[1], [0], [0], [1], [0, 0, 1, 1], [], []>} : vector<224x4xf32>, vector<4x8xf32>, vector<224x8xf32> -> vector<224x8xf32>
    %29 = arith.addf %25, %28 : vector<224x8xf32>
    %30 = vector.extract_strided_slice %1 {offsets = [33, 0], sizes = [224, 4], strides = [1, 1]} : vector<264x4xf32> to vector<224x4xf32>
    %31 = vector.extract_strided_slice %2 {offsets = [28, 0], sizes = [4, 8], strides = [1, 1]} : vector<36x8xf32> to vector<4x8xf32>
    %cst_10 = arith.constant dense<0.000000e+00> : vector<224x8xf32>
    %32 = tpu.matmul %30, %31, %cst_10 {dimension_numbers = #tpu.dot_dimension_numbers<[1], [0], [0], [1], [0, 0, 1, 1], [], []>} : vector<224x4xf32>, vector<4x8xf32>, vector<224x8xf32> -> vector<224x8xf32>
    %33 = arith.addf %29, %32 : vector<224x8xf32>
    %34 = vector.extract_strided_slice %1 {offsets = [34, 0], sizes = [224, 4], strides = [1, 1]} : vector<264x4xf32> to vector<224x4xf32>
    %35 = vector.extract_strided_slice %2 {offsets = [32, 0], sizes = [4, 8], strides = [1, 1]} : vector<36x8xf32> to vector<4x8xf32>
    %cst_11 = arith.constant dense<0.000000e+00> : vector<224x8xf32>
    %36 = tpu.matmul %34, %35, %cst_11 {dimension_numbers = #tpu.dot_dimension_numbers<[1], [0], [0], [1], [0, 0, 1, 1], [], []>} : vector<224x4xf32>, vector<4x8xf32>, vector<224x8xf32> -> vector<224x8xf32>
    %37 = arith.addf %33, %36 : vector<224x8xf32>
    %c0_12 = arith.constant 0 : index
    %c0_13 = arith.constant 0 : index
    %c0_14 = arith.constant 0 : index
    %38 = vector.load %arg4[%c0_12, %c0_13, %c0_14] : memref<1x224x8xf32, #tpu.memory_space<vmem>>, vector<1x224x8xf32>
    %39 = vector.shape_cast %38 : vector<1x224x8xf32> to vector<224x8xf32>
    %40 = vector.shape_cast %37 : vector<224x8xf32> to vector<1x224x8xf32>
    tpu.vector_store %arg4[%c0_12, %c0_13, %c0_14], %40 {strides = array<i32>} : memref<1x224x8xf32, #tpu.memory_space<vmem>>, vector<1x224x8xf32>,
    %c0_i32 = arith.constant 0 : i32
    %41 = arith.cmpi eq, %arg0, %c0_i32 : i32
    %42 = arith.extui %41 : i1 to i32
    %c0_i32_15 = arith.constant 0 : i32
    %43 = arith.cmpi ne, %42, %c0_i32_15 : i32
    scf.if %43 {
      %cst_28 = arith.constant 0.000000e+00 : f32
      %58 = vector.broadcast %cst_28 : f32 to vector<1x8xf32>
      %c0_29 = arith.constant 0 : index
      %c0_30 = arith.constant 0 : index
      %59 = vector.load %arg5[%c0_29, %c0_30] : memref<1x8xf32, #tpu.memory_space<vmem>>, vector<1x8xf32>
      tpu.vector_store %arg5[%c0_29, %c0_30], %58 {strides = array<i32>} : memref<1x8xf32, #tpu.memory_space<vmem>>, vector<1x8xf32>,
      %cst_31 = arith.constant 0.000000e+00 : f32
      %60 = vector.broadcast %cst_31 : f32 to vector<1x8xf32>
      %c0_32 = arith.constant 0 : index
      %c0_33 = arith.constant 0 : index
      %61 = vector.load %arg6[%c0_32, %c0_33] : memref<1x8xf32, #tpu.memory_space<vmem>>, vector<1x8xf32>
      tpu.vector_store %arg6[%c0_32, %c0_33], %60 {strides = array<i32>} : memref<1x8xf32, #tpu.memory_space<vmem>>, vector<1x8xf32>,
    } else {
    }
    %c0_16 = arith.constant 0 : index
    %c0_17 = arith.constant 0 : index
    %44 = vector.load %arg3[%c0_16, %c0_17] : memref<224x1xf32, #tpu.memory_space<vmem>>, vector<224x1xf32>
    %45 = vector.broadcast %44 : vector<224x1xf32> to vector<224x8xf32>
    %46 = arith.mulf %37, %45 : vector<224x8xf32>
    %c0_18 = arith.constant 0 : index
    %c0_19 = arith.constant 0 : index
    %47 = vector.load %arg5[%c0_18, %c0_19] : memref<1x8xf32, #tpu.memory_space<vmem>>, vector<1x8xf32>
    %cst_20 = arith.constant dense<0.000000e+00> : vector<8xf32>
    %48 = vector.multi_reduction <add>, %46, %cst_20 [0] : vector<224x8xf32> to vector<8xf32>
    %49 = vector.shape_cast %48 : vector<8xf32> to vector<1x8xf32>
    %50 = arith.addf %47, %49 : vector<1x8xf32>
    %c0_21 = arith.constant 0 : index
    %c0_22 = arith.constant 0 : index
    %51 = vector.load %arg5[%c0_21, %c0_22] : memref<1x8xf32, #tpu.memory_space<vmem>>, vector<1x8xf32>
    tpu.vector_store %arg5[%c0_21, %c0_22], %50 {strides = array<i32>} : memref<1x8xf32, #tpu.memory_space<vmem>>, vector<1x8xf32>,
    %c0_23 = arith.constant 0 : index
    %c0_24 = arith.constant 0 : index
    %52 = vector.load %arg6[%c0_23, %c0_24] : memref<1x8xf32, #tpu.memory_space<vmem>>, vector<1x8xf32>
    %53 = arith.mulf %37, %46 : vector<224x8xf32>
    %cst_25 = arith.constant dense<0.000000e+00> : vector<8xf32>
    %54 = vector.multi_reduction <add>, %53, %cst_25 [0] : vector<224x8xf32> to vector<8xf32>
    %55 = vector.shape_cast %54 : vector<8xf32> to vector<1x8xf32>
    %56 = arith.addf %52, %55 : vector<1x8xf32>
    %c0_26 = arith.constant 0 : index
    %c0_27 = arith.constant 0 : index
    %57 = vector.load %arg6[%c0_26, %c0_27] : memref<1x8xf32, #tpu.memory_space<vmem>>, vector<1x8xf32>
    tpu.vector_store %arg6[%c0_26, %c0_27], %56 {strides = array<i32>} : memref<1x8xf32, #tpu.memory_space<vmem>>, vector<1x8xf32>,
    return
  }
  func.func @transform_0(%arg0: i32) -> (i32, i32, i32) {
    %c0_i32 = arith.constant 0 : i32
    %c0_i32_0 = arith.constant 0 : i32
    %c0_i32_1 = arith.constant 0 : i32
    return %arg0, %c0_i32, %c0_i32_0 : i32, i32, i32
  }
  func.func @transform_1(%arg0: i32) -> (i32, i32) {
    %c0_i32 = arith.constant 0 : i32
    %c0_i32_0 = arith.constant 0 : i32
    %c0_i32_1 = arith.constant 0 : i32
    return %c0_i32, %c0_i32_0 : i32, i32
  }
  func.func @transform_2(%arg0: i32) -> (i32, i32) {
    %c0_i32 = arith.constant 0 : i32
    %c0_i32_0 = arith.constant 0 : i32
    %c0_i32_1 = arith.constant 0 : i32
    return %c0_i32, %c0_i32_0 : i32, i32
  }
  func.func @transform_3(%arg0: i32) -> (i32, i32, i32) {
    %c0_i32 = arith.constant 0 : i32
    %c0_i32_0 = arith.constant 0 : i32
    %c0_i32_1 = arith.constant 0 : i32
    return %arg0, %c0_i32, %c0_i32_0 : i32, i32, i32
  }
  func.func @transform_4(%arg0: i32) -> (i32, i32) {
    %c0_i32 = arith.constant 0 : i32
    %c0_i32_0 = arith.constant 0 : i32
    %c0_i32_1 = arith.constant 0 : i32
    return %c0_i32, %c0_i32_0 : i32, i32
  }
  func.func @transform_5(%arg0: i32) -> (i32, i32) {
    %c0_i32 = arith.constant 0 : i32
    %c0_i32_0 = arith.constant 0 : i32
    %c0_i32_1 = arith.constant 0 : i32
    return %c0_i32, %c0_i32_0 : i32, i32
  }
}

module attributes {stable_mosaic.version = 11 : i64} {
  func.func @_bn_gelu_kernel(%arg0: i32, %arg1: memref<28x128xf32, #tpu.memory_space<vmem>>, %arg2: memref<1x128xf32, #tpu.memory_space<vmem>>, %arg3: memref<1x128xf32, #tpu.memory_space<vmem>>, %arg4: memref<28x128xf32, #tpu.memory_space<vmem>>) attributes {dimension_semantics = [#tpu.dimension_semantics<parallel>], iteration_bounds = array<i64: 1>, scalar_prefetch = 0 : i64, scratch_operands = 0 : i64, tpu.core_type = #tpu.core_type<tc>, window_params = [{transform_indices = @transform_0, window_bounds = array<i64: 28, 128>}, {pipeline_mode = #tpu.pipeline_mode<synchronous>, transform_indices = @transform_1, window_bounds = array<i64: 1, 128>}, {pipeline_mode = #tpu.pipeline_mode<synchronous>, transform_indices = @transform_2, window_bounds = array<i64: 1, 128>}, {transform_indices = @transform_3, window_bounds = array<i64: 28, 128>}]} {
    %c0 = arith.constant 0 : index
    %c0_0 = arith.constant 0 : index
    %0 = vector.load %arg1[%c0, %c0_0] : memref<28x128xf32, #tpu.memory_space<vmem>>, vector<28x128xf32>
    %c0_1 = arith.constant 0 : index
    %c0_2 = arith.constant 0 : index
    %1 = vector.load %arg2[%c0_1, %c0_2] : memref<1x128xf32, #tpu.memory_space<vmem>>, vector<1x128xf32>
    %2 = vector.broadcast %1 : vector<1x128xf32> to vector<28x128xf32>
    %3 = arith.mulf %0, %2 : vector<28x128xf32>
    %c0_3 = arith.constant 0 : index
    %c0_4 = arith.constant 0 : index
    %4 = vector.load %arg3[%c0_3, %c0_4] : memref<1x128xf32, #tpu.memory_space<vmem>>, vector<1x128xf32>
    %5 = vector.broadcast %4 : vector<1x128xf32> to vector<28x128xf32>
    %6 = arith.addf %3, %5 : vector<28x128xf32>
    %cst = arith.constant 5.000000e-01 : f32
    %7 = vector.broadcast %cst : f32 to vector<28x128xf32>
    %8 = arith.mulf %7, %6 : vector<28x128xf32>
    %cst_5 = arith.constant 0.707106769 : f32
    %9 = vector.broadcast %cst_5 : f32 to vector<28x128xf32>
    %10 = arith.mulf %6, %9 : vector<28x128xf32>
    %11 = math.erf %10 : vector<28x128xf32>
    %cst_6 = arith.constant 1.000000e+00 : f32
    %12 = vector.broadcast %cst_6 : f32 to vector<28x128xf32>
    %13 = arith.addf %12, %11 : vector<28x128xf32>
    %14 = arith.mulf %8, %13 : vector<28x128xf32>
    %c0_7 = arith.constant 0 : index
    %c0_8 = arith.constant 0 : index
    %15 = vector.load %arg4[%c0_7, %c0_8] : memref<28x128xf32, #tpu.memory_space<vmem>>, vector<28x128xf32>
    tpu.vector_store %arg4[%c0_7, %c0_8], %14 {strides = array<i32>} : memref<28x128xf32, #tpu.memory_space<vmem>>, vector<28x128xf32>,
    return
  }
  func.func @transform_0(%arg0: i32) -> (i32, i32) {
    %c0_i32 = arith.constant 0 : i32
    %c0_i32_0 = arith.constant 0 : i32
    return %arg0, %c0_i32 : i32, i32
  }
  func.func @transform_1(%arg0: i32) -> (i32, i32) {
    %c0_i32 = arith.constant 0 : i32
    %c0_i32_0 = arith.constant 0 : i32
    %c0_i32_1 = arith.constant 0 : i32
    return %c0_i32, %c0_i32_0 : i32, i32
  }
  func.func @transform_2(%arg0: i32) -> (i32, i32) {
    %c0_i32 = arith.constant 0 : i32
    %c0_i32_0 = arith.constant 0 : i32
    %c0_i32_1 = arith.constant 0 : i32
    return %c0_i32, %c0_i32_0 : i32, i32
  }
  func.func @transform_3(%arg0: i32) -> (i32, i32) {
    %c0_i32 = arith.constant 0 : i32
    %c0_i32_0 = arith.constant 0 : i32
    return %arg0, %c0_i32 : i32, i32
  }
}

</mosaic_0001>

<bundles_post_ra>
// kernel: tile.13
= control target key start
LH: loop header
LB: loop body
LE: loop exit
PB: predicated region body
PF: predicated region fallthrough
CT: control target
= control target key end

     0   :  { %s28_s0 = inlined_call_operand.vmem [shape: f32[8], index: 0, kind: input, shape index: {}]   ;;  %s29_s1 = inlined_call_operand.vmem [shape: f32[16,8], index: 1, kind: output, shape index: {}]  }
   0x1   :  { %v4_v0 = vld [vmem:[%s28_s0] ss:$0 sm:$0xff] }
   0x2   :  { %5 = vst [vmem:[%s29_s1] sm:$0xff] %v4_v0  ;;  %8 = vst [vmem:[%s29_s1 + $0x8] sm:$0xff] %v4_v0 }

// kernel: tile.14
= control target key start
LH: loop header
LB: loop body
LE: loop exit
PB: predicated region body
PF: predicated region fallthrough
CT: control target
= control target key end

     0   :  { %s133_s10 = smov 120   ;;  %s134_s11 = smov 104   ;;  %vm3_vm0 = vcmask 64512   ;;  %vm9_vm1 = vcmask 1048512   ;;  %vm15_vm2 = vcmask 982912   ;;  %vm21_vm3 = vcmask 917312   ;;  %s209_s0 = inlined_call_operand.vmem [shape: f32[16,8], index: 0, kind: input, shape index: {}]   ;;  %s210_s1 = inlined_call_operand.vmem [shape: f32[1,128], index: 1, kind: output, shape index: {}]  }
   0x1   :  { %v103_v0 = vld [vmem:[%s209_s0 + $0xf] sm:$0x1]   ;;  %v105_v1 = vld [vmem:[%s209_s0 + $0xd] sm:$0x1]   ;;  %v104_v2 = vld [vmem:[%s209_s0 + $0xe] sm:$0x1]  }
   0x2   :  { %7 = vrot.lane.b32.xlu0 %v103_v0, %s133_s10  ;;  %19 = vrot.lane.b32.xlu1 %v105_v1, %s134_s11  ;;  %v106_v3 = vld [vmem:[%s209_s0 + $0xc] sm:$0x1]   ;;  %s135_s16 = smov 112   ;;  %s136_s17 = smov 96   ;;  %v107_v4 = vld [vmem:[%s209_s0 + $0xb] sm:$0x1]  }
   0x3   :  { %v108_v5 = vld [vmem:[%s209_s0 + $0xa] sm:$0x1]   ;;  %v2_v6 = vld [vmem:[%s209_s0] sm:$0x1]   ;;  %s137_s24 = smov 88   ;;  %s138_s25 = smov 80  }
   0x4   :  { %4 = vst.msk [vmem:[#allocation0] sm:$0x1] %vm3_vm0, %v2_v6   ;;  %v109_v7 = vld [vmem:[%s209_s0 + $0x9] sm:$0x1]   ;;  %v110_v8 = vld [vmem:[%s209_s0 + $0x8] sm:$0x1]  }
   0x5   :  { %s139_s30 = smov 72   ;;  %s140_s2 = smov 64   ;;  %v111_v9 = vld [vmem:[%s209_s0 + $0x7] sm:$0x1]   ;;  %v112_v10 = vld [vmem:[%s209_s0 + $0x6] sm:$0x1]  }
   0x6   :  { %13 = vrot.lane.b32.xlu0 %v104_v2, %s135_s16  ;;  %25 = vrot.lane.b32.xlu1 %v106_v3, %s136_s17  ;;  %s141_s7 = smov 56   ;;  %s142_s8 = smov 48   ;;  %v113_v11 = vld [vmem:[%s209_s0 + $0x5] sm:$0x1]   ;;  %v114_v12 = vld [vmem:[%s209_s0 + $0x4] sm:$0x1]  }
   0x7   :  { %s143_s13 = smov 40   ;;  %s144_s14 = smov 32   ;;  %v115_v13 = vld [vmem:[%s209_s0 + $0x3] sm:$0x1]   ;;  %v116_v14 = vld [vmem:[%s209_s0 + $0x2] sm:$0x1]  }
   0x8   :  { %s145_s19 = smov 24   ;;  %s146_s20 = smov 16   ;;  %v117_v15 = vld [vmem:[%s209_s0 + $0x1] sm:$0x1]   ;;  %vm27_vm4 = vcmask 851712   ;;  %vm33_vm5 = vcmask 786112  }
   0x9   :  { %s147_s0 = smov 8   ;;  %vm39_vm6 = vcmask 720512   ;;  %vm45_vm7 = vcmask 654912   ;;  %vm51_vm8 = vcmask 589312   ;;  %vm57_vm9 = vcmask 523712  }
   0xa   :  { %31 = vrot.lane.b32.xlu0 %v107_v4, %s137_s24  ;;  %37 = vrot.lane.b32.xlu1 %v108_v5, %s138_s25  ;;  %vm63_vm10 = vcmask 458112   ;;  %vm69_vm11 = vcmask 392512   ;;  %vm75_vm12 = vcmask 326912   ;;  %vm81_vm13 = vcmask 261312  }
   0xb   :  { %vm87_vm14 = vcmask 195712   ;;  %vm93_vm15 = vcmask 130112  }
   0xe   :  { %43 = vrot.lane.b32.xlu0 %v109_v7, %s139_s30  ;;  %49 = vrot.lane.b32.xlu1 %v110_v8, %s140_s2 }
  0x12   :  { %55 = vrot.lane.b32.xlu0 %v111_v9, %s141_s7  ;;  %61 = vrot.lane.b32.xlu1 %v112_v10, %s142_s8 }
  0x16   :  { %67 = vrot.lane.b32.xlu0 %v113_v11, %s143_s13  ;;  %73 = vrot.lane.b32.xlu1 %v114_v12, %s144_s14 }
  0x1a   :  { %79 = vrot.lane.b32.xlu0 %v115_v13, %s145_s19  ;;  %85 = vrot.lane.b32.xlu1 %v116_v14, %s146_s20 }
  0x1e   :  { %91 = vrot.lane.b32.xlu0 %v117_v15, %s147_s0 }
  0x74   :  { %v8_v16 = vpop.permute.xlu0 %7   ;;  %v20_v17 = vpop.permute.xlu1 %19  }
  0x75   :  { %10 = vst.msk [vmem:[#allocation0] sm:$0x1] %vm9_vm1, %v8_v16  }
  0x78   :  { %v14_v18 = vpop.permute.xlu0 %13   ;;  %v26_v19 = vpop.permute.xlu1 %25  }
  0x79   :  { %16 = vst.msk [vmem:[#allocation0] sm:$0x1] %vm15_vm2, %v14_v18  }
  0x7a   :  { %22 = vst.msk [vmem:[#allocation0] sm:$0x1] %vm21_vm3, %v20_v17  }
  0x7b   :  { %28 = vst.msk [vmem:[#allocation0] sm:$0x1] %vm27_vm4, %v26_v19  }
  0x7c   :  { %v32_v20 = vpop.permute.xlu0 %31   ;;  %v38_v21 = vpop.permute.xlu1 %37  }
  0x7d   :  { %34 = vst.msk [vmem:[#allocation0] sm:$0x1] %vm33_vm5, %v32_v20  }
  0x7e   :  { %40 = vst.msk [vmem:[#allocation0] sm:$0x1] %vm39_vm6, %v38_v21  }
  0x80   :  { %v44_v22 = vpop.permute.xlu0 %43   ;;  %v50_v23 = vpop.permute.xlu1 %49  }
  0x81   :  { %46 = vst.msk [vmem:[#allocation0] sm:$0x1] %vm45_vm7, %v44_v22  }
  0x82   :  { %52 = vst.msk [vmem:[#allocation0] sm:$0x1] %vm51_vm8, %v50_v23  }
  0x84   :  { %v56_v24 = vpop.permute.xlu0 %55   ;;  %v62_v25 = vpop.permute.xlu1 %61  }
  0x85   :  { %58 = vst.msk [vmem:[#allocation0] sm:$0x1] %vm57_vm9, %v56_v24  }
  0x86   :  { %64 = vst.msk [vmem:[#allocation0] sm:$0x1] %vm63_vm10, %v62_v25  }
  0x88   :  { %v68_v26 = vpop.permute.xlu0 %67   ;;  %v74_v27 = vpop.permute.xlu1 %73  }
  0x89   :  { %70 = vst.msk [vmem:[#allocation0] sm:$0x1] %vm69_vm11, %v68_v26  }
  0x8a   :  { %76 = vst.msk [vmem:[#allocation0] sm:$0x1] %vm75_vm12, %v74_v27  }
  0x8c   :  { %v80_v28 = vpop.permute.xlu0 %79   ;;  %v86_v29 = vpop.permute.xlu1 %85  }
  0x8d   :  { %82 = vst.msk [vmem:[#allocation0] sm:$0x1] %vm81_vm13, %v80_v28  }
  0x8e   :  { %88 = vst.msk [vmem:[#allocation0] sm:$0x1] %vm87_vm14, %v86_v29  }
  0x90   :  { %v92_v30 = vpop.permute.xlu0 %91  }
  0x91   :  { %94 = vst.msk [vmem:[#allocation0] sm:$0x1] %vm93_vm15, %v92_v30  }
  0x98   :  { %v99_v31 = vld [vmem:[#allocation0] sm:$0x1] }
  0x99   :  { %102 = vst [vmem:[%s210_s1] sm:$0x1] %v99_v31 }

// kernel: conv_bn_layer_forward.3
= control target key start
LH: loop header
LB: loop body
LE: loop exit
PB: predicated region body
PF: predicated region fallthrough
CT: control target
= control target key end

     0   :  { %s128_s0 = inlined_call_operand.vmem [shape: f32[28,128], index: 0, kind: input, shape index: {}, may-alias: {0,3}]   ;;  %s129_s1 = inlined_call_operand.vmem [shape: f32[1,128], index: 1, kind: input, shape index: {}]   ;;  %s130_s2 = inlined_call_operand.vmem [shape: f32[1,128], index: 2, kind: input, shape index: {}]   ;;  %s131_s3 = inlined_call_operand.vmem [shape: f32[28,128], index: 3, kind: output, shape index: {}, may-alias: {0,3}]  }
   0x1   :  { %v14_v0 = vld [vmem:[%s128_s0] sm:$0xff]  ;;  %v15_v4 = vld [vmem:[%s128_s0 + $0x8] sm:$0xff]  ;;  %v16_v5 = vld [vmem:[%s128_s0 + $0x10] sm:$0xff] }
   0x2   :  { %v68_v1 = vld [vmem:[%s129_s1] ss:$0 sm:$0xff]  ;;  %v17_v6 = vld [vmem:[%s128_s0 + $0x18] sm:$0xf] }
   0x3   :  { %v69_v2 = vld [vmem:[%s130_s2] ss:$0 sm:$0xff]  ;;  %v25_v3 = vmul.f32 %v68_v1, %v14_v0  ;;  %v26_v7 = vmul.f32 %v68_v1, %v15_v4  ;;  %v27_v8 = vmul.f32 %v68_v1, %v16_v5  ;;  %v28_v9 = vmul.f32 %v68_v1, %v17_v6 }
   0x5   :  { %v36_v10 = vadd.f32 %v69_v2, %v25_v3  ;;  %v37_v11 = vadd.f32 %v69_v2, %v26_v7  ;;  %v38_v12 = vadd.f32 %v69_v2, %v27_v8  ;;  %v39_v13 = vadd.f32 %v69_v2, %v28_v9 }
   0x7   :  { %v44_v14 = vmul.f32 0.70710677, %v36_v10  ;;  %v45_v15 = vmul.f32 0.70710677, %v37_v11  ;;  %v46_v16 = vmul.f32 0.70710677, %v38_v12 }
   0x8   :  { %v47_v17 = vmul.f32 0.70710677, %v39_v13  ;;  %v40_v18 = vmul.f32 0.5, %v36_v10  ;;  %v41_v20 = vmul.f32 0.5, %v37_v11  ;;  %v42_v23 = vmul.f32 0.5, %v38_v12 }
   0x9   :  { %70 = verf.f32 %v44_v14  ;;  %v43_v26 = vmul.f32 0.5, %v39_v13 }
   0xa   :  { %72 = verf.f32 %v45_v15 }
   0xb   :  { %74 = verf.f32 %v46_v16 }
   0xc   :  { %76 = verf.f32 %v47_v17 }
  0x16   :  { %v71_v19 = vpop.eup %70 }
  0x17   :  { %v73_v21 = vpop.eup %72  ;;  %v52_v22 = vadd.f32 1.0, %v71_v19 }
  0x18   :  { %v75_v24 = vpop.eup %74  ;;  %v53_v25 = vadd.f32 1.0, %v73_v21 }
  0x19   :  { %v77_v27 = vpop.eup %76  ;;  %v56_v28 = vmul.f32 %v52_v22, %v40_v18  ;;  %v54_v29 = vadd.f32 1.0, %v75_v24 }
  0x1a   :  { %v57_v30 = vmul.f32 %v53_v25, %v41_v20  ;;  %v55_v31 = vadd.f32 1.0, %v77_v27 }
  0x1b   :  { %60 = vst [vmem:[%s131_s3] sm:$0xff] %v56_v28  ;;  %v58_v32 = vmul.f32 %v54_v29, %v42_v23 }
  0x1c   :  { %61 = vst [vmem:[%s131_s3 + $0x8] sm:$0xff] %v57_v30  ;;  %v59_v33 = vmul.f32 %v55_v31, %v43_v26 }
  0x1d   :  { %62 = vst [vmem:[%s131_s3 + $0x10] sm:$0xff] %v58_v32 }
  0x1e   :  { %63 = vst [vmem:[%s131_s3 + $0x18] sm:$0xf] %v59_v33 }

// kernel: conv_bn_layer_forward.2
= control target key start
LH: loop header
LB: loop body
LE: loop exit
PB: predicated region body
PF: predicated region fallthrough
CT: control target
= control target key end

     0   :  { %s4125_s18 = smov 0   ;;  %s5821_s0 = inlined_call_operand.vmem [shape: f32[2,264,4], index: 0, kind: input, shape index: {}]   ;;  %s5822_s1 = inlined_call_operand.vmem [shape: f32[36,8], index: 1, kind: input, shape index: {}]   ;;  %s5823_s2 = inlined_call_operand.vmem [shape: f32[224,1], index: 2, kind: input, shape index: {}]   ;;  %s5824_s3 = inlined_call_operand.vmem [shape: f32[2,224,8], index: 3, kind: output, shape index: {0}]   ;;  %s5825_s4 = inlined_call_operand.vmem [shape: f32[1,8], index: 4, kind: output, shape index: {1}]   ;;  %s5826_s5 = inlined_call_operand.vmem [shape: f32[1,8], index: 5, kind: output, shape index: {2}]  }
   0x1 LB: > { %s4131_s19 = sadd.s32 4294967295, %s4091_s18   ;;  %p3145_p0 = scmp.ge.s32.totalorder %s4091_s18, 1  ;;  %s4091_s18 = sphi %s4125_s18, %s16_s18  }
   0x2   : > { %p182_p1 = scmp.lt.s32.totalorder %s4091_s18, 3 }
   0x4   : > { %p183_p2 = pnand %p3145_p0, %p182_p1 }
   0x6   : > { %186 = sbr.rel (%p183_p2) target bundleno = 678 (0x2a6), region = 32 }
   0xb   : > { %v253_v0 = vld [vmem:[%s5822_s1] sm:$0xff]  ;;  %vm404_vm0 = vcmask 1043456   ;;  %p210_p3 = scmp.lt.s32.totalorder %s4131_s19, 1  ;;  %v4145_v2 = vld [vmem:[%s5822_s1 + $0x8] sm:$0xff]  ;;  %vm287_vm1 = vcmask 1046528   ;;  %vm347_vm2 = vcmask 31744  }
   0xc   : > { %v346_v1 = vrot.slane %v253_v0, 4  ;;  %v5827_v6 = vrot.slane %v4145_v2, 4  ;;  %v4252_v40 = vld [vmem:[%s5822_s1 + $0x10] sm:$0xff]  ;;  %vm875_vm3 = vcmask 1045504   ;;  %vm2685_vm4 = vcmask 64512   ;;  %p3409_p4 = scmp.ne.s32.totalorder %s4131_s19, 0 }
   0xd   : > { %s4140_s22 = scalar_select %p210_p3, %s4131_s19, 1 }
   0xe   : > { %4069 = vmatprep.subr.msk.mxu1 %vm404_vm0, %v346_v1  ;;  %3673 = vmatprep.subr.msk.mxu0 %vm404_vm0, %v346_v1 }
   0xf   : > { %4070 = vmatpush3.msk.msra.mxu1 %vm404_vm0, %v346_v1  ;;  %3674 = vmatpush3.msk.msra.mxu0 %vm404_vm0, %v346_v1  ;;  %s4071_s25 = smul.u32 264, %s4140_s22 }
  0x10   : > { %3717 = vmatprep.subr.msk.mxu1 %vm404_vm0, %v253_v0  ;;  %3761 = vmatprep.subr.msk.mxu0 %vm404_vm0, %v4145_v2  ;;  %s4072_s10 = smul.u32 224, %s4140_s22 }
  0x11   : > { %s4158_s28 = scalar_lea.vmem %s5821_s0, %s4071_s25 }
  0x12   : > { %v4161_v3 = vld [vmem:[%s4158_s28] sm:$0xff]  ;;  %v4164_v4 = vld [vmem:[%s4158_s28 + $0x8] sm:$0xff]  ;;  %v4167_v5 = vld [vmem:[%s4158_s28 + $0x70] sm:$0xff]  ;;  %s5388_s13 = scalar_lea.vmem %s5824_s3, %s4072_s10 }
  0x13   : > { %v288_v7 = vrot.slane %v4161_v3, 1  ;;  %v289_v8 = vrot.slane %v4164_v4, 1  ;;  %v4173_v9 = vld [vmem:[%s4158_s28 + $0x78] sm:$0xff]  ;;  %v5828_v10 = vrot.slane %v4167_v5, 1  ;;  %v4177_v11 = vld [vmem:[%s4158_s28 + $0x10] sm:$0xff]  ;;  %v4180_v12 = vld [vmem:[%s4158_s28 + $0x80] sm:$0xff] }
  0x14   : > { %v317_v13 = vrot.slane %v4173_v9, 1  ;;  %v291_v14 = vrot.slane %v4177_v11, 1  ;;  %v319_v15 = vrot.slane %v4180_v12, 1  ;;  %v4186_v16 = vld [vmem:[%s4158_s28 + $0x18] sm:$0xff]  ;;  %v4189_v17 = vld [vmem:[%s4158_s28 + $0x88] sm:$0xff]  ;;  %v4192_v18 = vld [vmem:[%s4158_s28 + $0x20] sm:$0xff] }
  0x15   : > { %v290_v19 = vsel %vm287_vm1, %v288_v7, %v289_v8  ;;  %v293_v20 = vrot.slane %v4186_v16, 1  ;;  %v321_v21 = vrot.slane %v4189_v17, 1  ;;  %v295_v22 = vrot.slane %v4192_v18, 1  ;;  %v4199_v23 = vld [vmem:[%s4158_s28 + $0x90] sm:$0xff]  ;;  %v4202_v24 = vld [vmem:[%s4158_s28 + $0x28] sm:$0xff]  ;;  %v4205_v25 = vld [vmem:[%s4158_s28 + $0x98] sm:$0xff] }
  0x16   : > { %3675 = vmatprep.mubr.msk.f32.mxu0 %vm347_vm2, %v290_v19  ;;  %v4211_v26 = vsel %vm287_vm1, %v5828_v10, %v317_v13  ;;  %v292_v27 = vsel %vm287_vm1, %v289_v8, %v291_v14  ;;  %v4215_v28 = vsel %vm287_vm1, %v317_v13, %v319_v15  ;;  %v323_v29 = vrot.slane %v4199_v23, 1  ;;  %v4219_v30 = vld [vmem:[%s4158_s28 + $0x30] sm:$0xff]  ;;  %v4222_v31 = vld [vmem:[%s4158_s28 + $0xa0] sm:$0xff]  ;;  %v4225_v32 = vld [vmem:[%s4158_s28 + $0x38] sm:$0xff] }
  0x17   : > { %3696 = vmatprep.mubr.msk.f32.mxu1 %vm347_vm2, %v4211_v26  ;;  %3676 = vmatmul.mubr.msk.f32.vlgmr.msra.gmra.mxu0 %vm347_vm2, %v292_v27  ;;  %v4231_v33 = vsel %vm287_vm1, %v291_v14, %v293_v20  ;;  %v4234_v34 = vsel %vm287_vm1, %v319_v15, %v321_v21  ;;  %v297_v35 = vrot.slane %v4202_v24, 1  ;;  %v4238_v36 = vld [vmem:[%s4158_s28 + $0xa8] sm:$0xff]  ;;  %v4245_v37 = vsel %vm287_vm1, %v293_v20, %v295_v22  ;;  %v4266_v45 = vld [vmem:[%s4158_s28 + $0x40] sm:$0xff]  ;;  %v4275_v48 = vld [vmem:[%s4158_s28 + $0xb0] sm:$0xff] }
  0x18   : > { %3697 = vmatmul.mubr.msk.f32.vlgmr.msra.gmra.mxu1 %vm347_vm2, %v4215_v28  ;;  %3762 = vmatpush3.msk.msra.mxu0 %vm404_vm0, %v4145_v2  ;;  %v325_v38 = vrot.slane %v4205_v25, 1  ;;  %v299_v39 = vrot.slane %v4219_v30, 1  ;;  %v4258_v41 = vsel %vm287_vm1, %v321_v21, %v323_v29  ;;  %v327_v43 = vrot.slane %v4222_v31, 1  ;;  %v4278_v49 = vld [vmem:[%s4158_s28 + $0x48] sm:$0xff]  ;;  %v4286_v50 = vld [vmem:[%s4158_s28 + $0xb8] sm:$0xff]  ;;  %v4309_v57 = vld [vmem:[%s4158_s28 + $0x50] sm:$0xff] }
  0x19   : > { %3718 = vmatpush3.msk.msra.mxu1 %vm404_vm0, %v253_v0  ;;  %3678 = vmatprep.mubr.msk.f32.mxu0 %vm347_vm2, %v4231_v33  ;;  %v4261_v42 = vsel %vm287_vm1, %v295_v22, %v297_v35  ;;  %v301_v44 = vrot.slane %v4225_v32, 1  ;;  %v329_v47 = vrot.slane %v4238_v36, 1  ;;  %v303_v52 = vrot.slane %v4266_v45, 1  ;;  %v4316_v60 = vld [vmem:[%s4158_s28 + $0xc0] sm:$0xff]  ;;  %v4319_v61 = vld [vmem:[%s4158_s28 + $0x58] sm:$0xff]  ;;  %v4324_v62 = vld [vmem:[%s4158_s28 + $0xc8] sm:$0xff] }
  0x1a   : > { %3699 = vmatprep.mubr.msk.f32.mxu1 %vm347_vm2, %v4234_v34  ;;  %v4271_v46 = vsel %vm287_vm1, %v323_v29, %v325_v38  ;;  %3805 = vmatprep.subr.msk.mxu1 %vm404_vm0, %v5827_v6  ;;  %v4295_v51 = vsel %vm287_vm1, %v297_v35, %v299_v39  ;;  %v4301_v53 = vsel %vm287_vm1, %v325_v38, %v327_v43  ;;  %v331_v55 = vrot.slane %v4275_v48, 1  ;;  %v4345_v14 = vld [vmem:[%s4158_s28 + $0x60] sm:$0xff]  ;;  %v4348_v15 = vld [vmem:[%s4158_s28 + $0xd0] sm:$0xff]  ;;  %v4355_v21 = vld [vmem:[%s4158_s28 + $0x68] sm:$0xff] }
  0x1b   : > { %3679 = vmatmul.mubr.msk.f32.gmra.mxu0 %vm347_vm2, %v4245_v37  ;;  %3849 = vmatprep.subr.msk.mxu0 %vm404_vm0, %v4252_v40  ;;  %v4304_v54 = vsel %vm287_vm1, %v299_v39, %v301_v44  ;;  %v305_v56 = vrot.slane %v4278_v49, 1  ;;  %v4312_v58 = vsel %vm287_vm1, %v327_v43, %v329_v47  ;;  %v333_v59 = vrot.slane %v4286_v50, 1  ;;  %v4360_v22 = vld [vmem:[%s4158_s28 + $0xd8] sm:$0xff] }
  0x1c   : > { %3700 = vmatmul.mubr.msk.f32.gmra.mxu1 %vm347_vm2, %v4258_v41  ;;  %3681 = vmatprep.mubr.msk.f32.mxu0 %vm347_vm2, %v4261_v42  ;;  %v4331_v63 = vsel %vm287_vm1, %v301_v44, %v303_v52  ;;  %v307_v0 = vrot.slane %v4309_v57, 1  ;;  %v4337_v1 = vsel %vm287_vm1, %v329_v47, %v331_v55  ;;  %v335_v8 = vrot.slane %v4316_v60, 1 }
  0x1d   : > { %3702 = vmatprep.mubr.msk.f32.mxu1 %vm347_vm2, %v4271_v46  ;;  %v4340_v7 = vsel %vm287_vm1, %v303_v52, %v305_v56  ;;  %v309_v13 = vrot.slane %v4319_v61, 1  ;;  %v4351_v19 = vsel %vm287_vm1, %v331_v55, %v333_v59  ;;  %v337_v20 = vrot.slane %v4324_v62, 1  ;;  %v4385_v52 = vld [vmem:[%s4158_s28 + $0xe0] sm:$0xff] }
  0x1e   : > { %v4367_v27 = vsel %vm287_vm1, %v305_v56, %v307_v0  ;;  %v311_v29 = vrot.slane %v4345_v14, 1  ;;  %v339_v35 = vrot.slane %v4348_v15, 1  ;;  %v4374_v38 = vsel %vm287_vm1, %v333_v59, %v335_v8 }
  0x1f   : > { %3682 = vmatmul.mubr.msk.f32.gmra.mxu0 %vm347_vm2, %v4295_v51  ;;  %v4377_v39 = vsel %vm287_vm1, %v307_v0, %v309_v13  ;;  %v313_v43 = vrot.slane %v4355_v21, 1  ;;  %v4381_v44 = vsel %vm287_vm1, %v335_v8, %v337_v20  ;;  %v341_v47 = vrot.slane %v4360_v22, 1 }
  0x20   : > { %3703 = vmatmul.mubr.msk.f32.gmra.mxu1 %vm347_vm2, %v4301_v53  ;;  %3684 = vmatprep.mubr.msk.f32.mxu0 %vm347_vm2, %v4304_v54  ;;  %5874 = vst [vmem:[#allocation2_spill] sm:$0xff] %v4381_v44  ;;  %v4394_v55 = vsel %vm287_vm1, %v309_v13, %v311_v29  ;;  %v4397_v56 = vsel %vm287_vm1, %v337_v20, %v339_v35  ;;  %v5833_v0 = vrot.slane %v4385_v52, 1  ;;  %v876_v8 = vrot.slane %v4161_v3, 2 }
  0x21   : > { %3705 = vmatprep.mubr.msk.f32.mxu1 %vm347_vm2, %v4312_v58  ;;  %5875 = vst [vmem:[#allocation3_spill] sm:$0xff] %v4397_v56  ;;  %v4402_v59 = vsel %vm287_vm1, %v311_v29, %v313_v43  ;;  %v877_v6 = vrot.slane %v4164_v4, 2  ;;  %v4408_v10 = vsel %vm287_vm1, %v339_v35, %v341_v47  ;;  %v5877_v13 = vrot.slane %v4167_v5, 1 }
  0x22   : > { %5876 = vst [vmem:[#allocation4_spill] sm:$0xff] %v4408_v10  ;;  %v879_v29 = vrot.slane %v4177_v11, 2  ;;  %v4427_v35 = vsel %vm287_vm1, %v341_v47, %v5833_v0  ;;  %v885_v47 = vrot.slane %v4202_v24, 2 }
  0x23   : > { %3685 = vmatmul.mubr.msk.f32.gmra.mxu0 %vm347_vm2, %v4331_v63  ;;  %v4419_v20 = vsel %vm287_vm1, %v313_v43, %v5877_v13  ;;  %v883_v13 = vrot.slane %v4192_v18, 2 }
  0x24   : > { %3706 = vmatmul.mubr.msk.f32.gmra.mxu1 %vm347_vm2, %v4337_v1  ;;  %3687 = vmatprep.mubr.msk.f32.mxu0 %vm347_vm2, %v4340_v7  ;;  %v880_v43 = vsel %vm875_vm3, %v877_v6, %v879_v29 }
  0x25   : > { %3708 = vmatprep.mubr.msk.f32.mxu1 %vm347_vm2, %v4351_v19 }
  0x27   : > { %3688 = vmatmul.mubr.msk.f32.gmra.mxu0 %vm347_vm2, %v4367_v27 }
  0x28   : > { %3709 = vmatmul.mubr.msk.f32.gmra.mxu1 %vm347_vm2, %v4374_v38  ;;  %3690 = vmatprep.mubr.msk.f32.mxu0 %vm347_vm2, %v4377_v39 }
  0x29   : > { %3711 = vmatprep.mubr.msk.f32.mxu1 %vm347_vm2, %v4381_v44  ;;  %v881_v44 = vrot.slane %v4186_v16, 2 }
  0x2b   : > { %3691 = vmatmul.mubr.msk.f32.gmra.mxu0 %vm347_vm2, %v4394_v55  ;;  %v4444_v0 = vsel %vm875_vm3, %v879_v29, %v881_v44  ;;  %v891_v29 = vrot.slane %v4266_v45, 2 }
  0x2c   : > { %3712 = vmatmul.mubr.msk.f32.gmra.mxu1 %vm347_vm2, %v4397_v56  ;;  %3693 = vmatprep.mubr.msk.f32.mxu0 %vm347_vm2, %v4402_v59  ;;  %v878_v56 = vsel %vm875_vm3, %v876_v8, %v877_v6  ;;  %v5834_v8 = vrot.slane %v4252_v40, 4  ;;  %v4451_v6 = vsel %vm875_vm3, %v881_v44, %v883_v13  ;;  %v889_v44 = vrot.slane %v4225_v32, 2 }
  0x2d   : > { %3714 = vmatprep.mubr.msk.f32.mxu1 %vm347_vm2, %v4408_v10 }
  0x2f   : > { %3694 = vmatmul.mubr.msk.f32.gmra.mxu0 %vm347_vm2, %v4419_v20 }
  0x30   : > { %3715 = vmatmul.mubr.msk.f32.gmra.mxu1 %vm347_vm2, %v4427_v35  ;;  %3763 = vmatprep.mubr.msk.f32.mxu0 %vm347_vm2, %v878_v56  ;;  %v4457_v56 = vld [vmem:[%s5822_s1 + $0x18] sm:$0xff] }
  0x31   : > { %3719 = vmatprep.mubr.msk.f32.mxu1 %vm347_vm2, %v4161_v3  ;;  %v887_v3 = vrot.slane %v4219_v30, 2 }
  0x33   : > { %3764 = vmatmul.mubr.msk.f32.vlgmr.msra.gmra.mxu0 %vm347_vm2, %v880_v43  ;;  %v5878_v43 = vrot.slane %v4145_v2, 4  ;;  %v4482_v2 = vsel %vm875_vm3, %v885_v47, %v887_v3 }
  0x34   : > { %3720 = vmatmul.mubr.msk.f32.vlgmr.msra.gmra.mxu1 %vm347_vm2, %v4164_v4  ;;  %3850 = vmatpush3.msk.msra.mxu0 %vm404_vm0, %v4252_v40  ;;  %v4465_v4 = vsel %vm875_vm3, %v883_v13, %v885_v47  ;;  %5880 = vst [vmem:[#allocation6_spill] sm:$0xff] %v4482_v2  ;;  %v4488_v13 = vsel %vm875_vm3, %v887_v3, %v889_v44 }
  0x35   : > { %3806 = vmatpush3.msk.msra.mxu1 %vm404_vm0, %v5878_v43  ;;  %3722 = vmatprep.mubr.msk.f32.mxu1 %vm347_vm2, %v4177_v11  ;;  %5879 = vst [vmem:[#allocation5_spill] sm:$0xff] %v4465_v4  ;;  %5881 = vst [vmem:[#allocation7_spill] sm:$0xff] %v4488_v13  ;;  %v893_v43 = vrot.slane %v4278_v49, 2  ;;  %v4498_v47 = vsel %vm875_vm3, %v889_v44, %v891_v29 }
  0x36   : > { %3766 = vmatprep.mubr.msk.f32.mxu0 %vm347_vm2, %v4444_v0  ;;  %3893 = vmatprep.subr.msk.mxu1 %vm404_vm0, %v5834_v8  ;;  %5882 = vst [vmem:[#allocation8_spill] sm:$0xff] %v4498_v47  ;;  %v895_v8 = vrot.slane %v4309_v57, 2 }
  0x37   : > { %3767 = vmatmul.mubr.msk.f32.gmra.mxu0 %vm347_vm2, %v4451_v6  ;;  %3937 = vmatprep.subr.msk.mxu0 %vm404_vm0, %v4457_v56  ;;  %v4504_v3 = vsel %vm875_vm3, %v891_v29, %v893_v43 }
  0x38   : > { %3723 = vmatmul.mubr.msk.f32.gmra.mxu1 %vm347_vm2, %v4186_v16  ;;  %3769 = vmatprep.mubr.msk.f32.mxu0 %vm347_vm2, %v4465_v4  ;;  %5883 = vst [vmem:[#allocation9_spill] sm:$0xff] %v4504_v3  ;;  %v897_v4 = vrot.slane %v4319_v61, 2  ;;  %v4514_v44 = vsel %vm875_vm3, %v893_v43, %v895_v8 }
  0x39   : > { %3725 = vmatprep.mubr.msk.f32.mxu1 %vm347_vm2, %v4192_v18  ;;  %5884 = vst [vmem:[#allocation10_spill] sm:$0xff] %v4514_v44 }
  0x3a   : > { %v4520_v29 = vsel %vm875_vm3, %v895_v8, %v897_v4 }
  0x3b   : > { %3770 = vmatmul.mubr.msk.f32.gmra.mxu0 %vm347_vm2, %v4482_v2  ;;  %5885 = vst [vmem:[#allocation11_spill] sm:$0xff] %v4520_v29  ;;  %v901_v2 = vrot.slane %v4355_v21, 2 }
  0x3c   : > { %3726 = vmatmul.mubr.msk.f32.gmra.mxu1 %vm347_vm2, %v4202_v24  ;;  %3772 = vmatprep.mubr.msk.f32.mxu0 %vm347_vm2, %v4488_v13  ;;  %v899_v13 = vrot.slane %v4345_v14, 2 }
  0x3d   : > { %3728 = vmatprep.mubr.msk.f32.mxu1 %vm347_vm2, %v4219_v30 }
  0x3e   : > { %v4530_v43 = vsel %vm875_vm3, %v897_v4, %v899_v13  ;;  %v4536_v8 = vsel %vm875_vm3, %v899_v13, %v901_v2 }
  0x3f   : > { %3773 = vmatmul.mubr.msk.f32.gmra.mxu0 %vm347_vm2, %v4498_v47  ;;  %5886 = vst [vmem:[#allocation12_spill] sm:$0xff] %v4530_v43  ;;  %5887 = vst [vmem:[#allocation13_spill] sm:$0xff] %v4536_v8  ;;  %v905_v47 = vrot.slane %v4173_v9, 2 }
  0x40   : > { %3729 = vmatmul.mubr.msk.f32.gmra.mxu1 %vm347_vm2, %v4225_v32  ;;  %3775 = vmatprep.mubr.msk.f32.mxu0 %vm347_vm2, %v4504_v3  ;;  %v903_v3 = vrot.slane %v4167_v5, 2 }
  0x41   : > { %3731 = vmatprep.mubr.msk.f32.mxu1 %vm347_vm2, %v4266_v45 }
  0x42   : > { %v4546_v4 = vsel %vm875_vm3, %v901_v2, %v903_v3  ;;  %v4552_v13 = vsel %vm875_vm3, %v903_v3, %v905_v47 }
  0x43   : > { %3776 = vmatmul.mubr.msk.f32.gmra.mxu0 %vm347_vm2, %v4514_v44  ;;  %5888 = vst [vmem:[#allocation14_spill] sm:$0xff] %v4546_v4  ;;  %5889 = vst [vmem:[#allocation15_spill] sm:$0xff] %v4552_v13  ;;  %v909_v44 = vrot.slane %v4189_v17, 2 }
  0x44   : > { %3732 = vmatmul.mubr.msk.f32.gmra.mxu1 %vm347_vm2, %v4278_v49  ;;  %3778 = vmatprep.mubr.msk.f32.mxu0 %vm347_vm2, %v4520_v29  ;;  %v907_v29 = vrot.slane %v4180_v12, 2 }
  0x45   : > { %3734 = vmatprep.mubr.msk.f32.mxu1 %vm347_vm2, %v4309_v57 }
  0x46   : > { %v4562_v2 = vsel %vm875_vm3, %v905_v47, %v907_v29  ;;  %v4568_v3 = vsel %vm875_vm3, %v907_v29, %v909_v44 }
  0x47   : > { %3779 = vmatmul.mubr.msk.f32.gmra.mxu0 %vm347_vm2, %v4530_v43  ;;  %5890 = vst [vmem:[#allocation16_spill] sm:$0xff] %v4562_v2  ;;  %5891 = vst [vmem:[#allocation17_spill] sm:$0xff] %v4568_v3  ;;  %v913_v43 = vrot.slane %v4205_v25, 2 }
  0x48   : > { %3735 = vmatmul.mubr.msk.f32.gmra.mxu1 %vm347_vm2, %v4319_v61  ;;  %3781 = vmatprep.mubr.msk.f32.mxu0 %vm347_vm2, %v4536_v8  ;;  %v911_v8 = vrot.slane %v4199_v23, 2 }
  0x49   : > { %3737 = vmatprep.mubr.msk.f32.mxu1 %vm347_vm2, %v4345_v14 }
  0x4a   : > { %v4578_v47 = vsel %vm875_vm3, %v909_v44, %v911_v8  ;;  %v4584_v29 = vsel %vm875_vm3, %v911_v8, %v913_v43 }
  0x4b   : > { %3782 = vmatmul.mubr.msk.f32.gmra.mxu0 %vm347_vm2, %v4546_v4  ;;  %5892 = vst [vmem:[#allocation18_spill] sm:$0xff] %v4578_v47  ;;  %5893 = vst [vmem:[#allocation19_spill] sm:$0xff] %v4584_v29  ;;  %v917_v4 = vrot.slane %v4238_v36, 2 }
  0x4c   : > { %3738 = vmatmul.mubr.msk.f32.gmra.mxu1 %vm347_vm2, %v4355_v21  ;;  %3784 = vmatprep.mubr.msk.f32.mxu0 %vm347_vm2, %v4552_v13  ;;  %v915_v13 = vrot.slane %v4222_v31, 2 }
  0x4d   : > { %3740 = vmatprep.mubr.msk.f32.mxu1 %vm347_vm2, %v4167_v5 }
  0x4e   : > { %v4594_v44 = vsel %vm875_vm3, %v913_v43, %v915_v13  ;;  %v4600_v8 = vsel %vm875_vm3, %v915_v13, %v917_v4 }
  0x4f   : > { %3785 = vmatmul.mubr.msk.f32.gmra.mxu0 %vm347_vm2, %v4562_v2  ;;  %5894 = vst [vmem:[#allocation20_spill] sm:$0xff] %v4594_v44  ;;  %5895 = vst [vmem:[#allocation21_spill] sm:$0xff] %v4600_v8  ;;  %v921_v2 = vrot.slane %v4286_v50, 2 }
  0x50   : > { %3741 = vmatmul.mubr.msk.f32.gmra.mxu1 %vm347_vm2, %v4173_v9  ;;  %3787 = vmatprep.mubr.msk.f32.mxu0 %vm347_vm2, %v4568_v3  ;;  %v919_v3 = vrot.slane %v4275_v48, 2 }
  0x51   : > { %3743 = vmatprep.mubr.msk.f32.mxu1 %vm347_vm2, %v4180_v12 }
  0x52   : > { %v4610_v43 = vsel %vm875_vm3, %v917_v4, %v919_v3  ;;  %v4616_v13 = vsel %vm875_vm3, %v919_v3, %v921_v2 }
  0x53   : > { %3788 = vmatmul.mubr.msk.f32.gmra.mxu0 %vm347_vm2, %v4578_v47  ;;  %5896 = vst [vmem:[#allocation22_spill] sm:$0xff] %v4616_v13  ;;  %v925_v47 = vrot.slane %v4324_v62, 2 }
  0x54   : > { %3744 = vmatmul.mubr.msk.f32.gmra.mxu1 %vm347_vm2, %v4189_v17  ;;  %3790 = vmatprep.mubr.msk.f32.mxu0 %vm347_vm2, %v4584_v29  ;;  %v923_v29 = vrot.slane %v4316_v60, 2 }
  0x55   : > { %3746 = vmatprep.mubr.msk.f32.mxu1 %vm347_vm2, %v4199_v23 }
  0x56   : > { %v4626_v4 = vsel %vm875_vm3, %v921_v2, %v923_v29  ;;  %v4632_v3 = vsel %vm875_vm3, %v923_v29, %v925_v47 }
  0x57   : > { %3791 = vmatmul.mubr.msk.f32.gmra.mxu0 %vm347_vm2, %v4594_v44  ;;  %v929_v44 = vrot.slane %v4360_v22, 2 }
  0x58   : > { %3747 = vmatmul.mubr.msk.f32.gmra.mxu1 %vm347_vm2, %v4205_v25  ;;  %3793 = vmatprep.mubr.msk.f32.mxu0 %vm347_vm2, %v4600_v8  ;;  %v927_v8 = vrot.slane %v4348_v15, 2 }
  0x59   : > { %3749 = vmatprep.mubr.msk.f32.mxu1 %vm347_vm2, %v4222_v31 }
  0x5a   : > { %v4642_v2 = vsel %vm875_vm3, %v925_v47, %v927_v8  ;;  %v4648_v29 = vsel %vm875_vm3, %v927_v8, %v929_v44  ;;  %v5872_v8 = vrot.slane %v4457_v56, 4 }
  0x5b   : > { %3794 = vmatmul.mubr.msk.f32.gmra.mxu0 %vm347_vm2, %v4610_v43 }
  0x5c   : > { %3750 = vmatmul.mubr.msk.f32.gmra.mxu1 %vm347_vm2, %v4238_v36  ;;  %3796 = vmatprep.mubr.msk.f32.mxu0 %vm347_vm2, %v4616_v13  ;;  %v5871_v13 = vrot.slane %v4385_v52, 2 }
  0x5d   : > { %3752 = vmatprep.mubr.msk.f32.mxu1 %vm347_vm2, %v4275_v48 }
  0x5e   : > { %v4659_v47 = vsel %vm875_vm3, %v929_v44, %v5871_v13  ;;  %v4681_v44 = vld [vmem:[%s5822_s1 + $0x20] sm:$0xf] }
  0x5f   : > { %3797 = vmatmul.mubr.msk.f32.gmra.mxu0 %vm347_vm2, %v4626_v4 }
  0x60   : > { %3753 = vmatmul.mubr.msk.f32.gmra.mxu1 %vm347_vm2, %v4286_v50  ;;  %3799 = vmatprep.mubr.msk.f32.mxu0 %vm347_vm2, %v4632_v3 }
  0x61   : > { %3755 = vmatprep.mubr.msk.f32.mxu1 %vm347_vm2, %v4316_v60 }
  0x63   : > { %3800 = vmatmul.mubr.msk.f32.gmra.mxu0 %vm347_vm2, %v4642_v2 }
  0x64   : > { %3756 = vmatmul.mubr.msk.f32.gmra.mxu1 %vm347_vm2, %v4324_v62  ;;  %3802 = vmatprep.mubr.msk.f32.mxu0 %vm347_vm2, %v4648_v29 }
  0x65   : > { %3758 = vmatprep.mubr.msk.f32.mxu1 %vm347_vm2, %v4348_v15 }
  0x67   : > { %3803 = vmatmul.mubr.msk.f32.gmra.mxu0 %vm347_vm2, %v4659_v47 }
  0x68   : > { %3759 = vmatmul.mubr.msk.f32.gmra.mxu1 %vm347_vm2, %v4360_v22  ;;  %3851 = vmatprep.mubr.msk.f32.mxu0 %vm347_vm2, %v4231_v33  ;;  %v5897_v33 = vrot.slane %v4252_v40, 4  ;;  %v4780_v40 = vld [vmem:[%s4158_s28 + $0xf0] sm:$0xff] }
  0x69   : > { %3807 = vmatprep.mubr.msk.f32.mxu1 %vm347_vm2, %v4177_v11  ;;  %v4768_v11 = vld [vmem:[%s4158_s28 + $0xe8] sm:$0xff]  ;;  %v1469_v13 = vrot.slane %v4780_v40, 1 }
  0x6b   : > { %3852 = vmatmul.mubr.msk.f32.vlgmr.msra.gmra.mxu0 %vm347_vm2, %v4245_v37  ;;  %v1467_v37 = vrot.slane %v4768_v11, 1 }
  0x6c   : > { %3808 = vmatmul.mubr.msk.f32.vlgmr.msra.gmra.mxu1 %vm347_vm2, %v4186_v16  ;;  %3938 = vmatpush3.msk.msra.mxu0 %vm404_vm0, %v4457_v56  ;;  %v5898_v16 = vld [vmem:[#allocation2_spill] sm:$0xff] }
  0x6d   : > { %3894 = vmatpush3.msk.msra.mxu1 %vm404_vm0, %v5897_v33  ;;  %3810 = vmatprep.mubr.msk.f32.mxu1 %vm347_vm2, %v4192_v18  ;;  %v5899_v33 = vld [vmem:[#allocation3_spill] sm:$0xff] }
  0x6e   : > { %3854 = vmatprep.mubr.msk.f32.mxu0 %vm347_vm2, %v4261_v42  ;;  %3981 = vmatprep.subr.msk.mxu1 %vm404_vm0, %v5872_v8  ;;  %v5900_v8 = vrot.slane %v4385_v52, 1 }
  0x6f   : > { %3855 = vmatmul.mubr.msk.f32.gmra.mxu0 %vm347_vm2, %v4295_v51  ;;  %4025 = vmatprep.subr.msk.mxu0 %vm404_vm0, %v4681_v44 }
  0x70   : > { %3811 = vmatmul.mubr.msk.f32.gmra.mxu1 %vm347_vm2, %v4202_v24  ;;  %3857 = vmatprep.mubr.msk.f32.mxu0 %vm347_vm2, %v4304_v54 }
  0x71   : > { %3813 = vmatprep.mubr.msk.f32.mxu1 %vm347_vm2, %v4219_v30 }
  0x73   : > { %3858 = vmatmul.mubr.msk.f32.gmra.mxu0 %vm347_vm2, %v4331_v63 }
  0x74   : > { %3814 = vmatmul.mubr.msk.f32.gmra.mxu1 %vm347_vm2, %v4225_v32  ;;  %3860 = vmatprep.mubr.msk.f32.mxu0 %vm347_vm2, %v4340_v7 }
  0x75   : > { %3816 = vmatprep.mubr.msk.f32.mxu1 %vm347_vm2, %v4266_v45 }
  0x77   : > { %3861 = vmatmul.mubr.msk.f32.gmra.mxu0 %vm347_vm2, %v4367_v27 }
  0x78   : > { %3817 = vmatmul.mubr.msk.f32.gmra.mxu1 %vm347_vm2, %v4278_v49  ;;  %3863 = vmatprep.mubr.msk.f32.mxu0 %vm347_vm2, %v4377_v39 }
  0x79   : > { %3819 = vmatprep.mubr.msk.f32.mxu1 %vm347_vm2, %v4309_v57 }
  0x7b   : > { %3864 = vmatmul.mubr.msk.f32.gmra.mxu0 %vm347_vm2, %v4394_v55 }
  0x7c   : > { %3820 = vmatmul.mubr.msk.f32.gmra.mxu1 %vm347_vm2, %v4319_v61  ;;  %3866 = vmatprep.mubr.msk.f32.mxu0 %vm347_vm2, %v4402_v59 }
  0x7d   : > { %3822 = vmatprep.mubr.msk.f32.mxu1 %vm347_vm2, %v4345_v14 }
  0x7f   : > { %3867 = vmatmul.mubr.msk.f32.gmra.mxu0 %vm347_vm2, %v4419_v20 }
  0x80   : > { %3823 = vmatmul.mubr.msk.f32.gmra.mxu1 %vm347_vm2, %v4355_v21  ;;  %3869 = vmatprep.mubr.msk.f32.mxu0 %vm347_vm2, %v4211_v26 }
  0x81   : > { %3825 = vmatprep.mubr.msk.f32.mxu1 %vm347_vm2, %v4167_v5 }
  0x83   : > { %3870 = vmatmul.mubr.msk.f32.gmra.mxu0 %vm347_vm2, %v4215_v28 }
  0x84   : > { %3826 = vmatmul.mubr.msk.f32.gmra.mxu1 %vm347_vm2, %v4173_v9  ;;  %3872 = vmatprep.mubr.msk.f32.mxu0 %vm347_vm2, %v4234_v34 }
  0x85   : > { %3828 = vmatprep.mubr.msk.f32.mxu1 %vm347_vm2, %v4180_v12 }
  0x87   : > { %3873 = vmatmul.mubr.msk.f32.gmra.mxu0 %vm347_vm2, %v4258_v41 }
  0x88   : > { %3829 = vmatmul.mubr.msk.f32.gmra.mxu1 %vm347_vm2, %v4189_v17  ;;  %3875 = vmatprep.mubr.msk.f32.mxu0 %vm347_vm2, %v4271_v46 }
  0x89   : > { %3831 = vmatprep.mubr.msk.f32.mxu1 %vm347_vm2, %v4199_v23 }
  0x8b   : > { %3876 = vmatmul.mubr.msk.f32.gmra.mxu0 %vm347_vm2, %v4301_v53 }
  0x8c   : > { %3832 = vmatmul.mubr.msk.f32.gmra.mxu1 %vm347_vm2, %v4205_v25  ;;  %3878 = vmatprep.mubr.msk.f32.mxu0 %vm347_vm2, %v4312_v58 }
  0x8d   : > { %3834 = vmatprep.mubr.msk.f32.mxu1 %vm347_vm2, %v4222_v31 }
  0x8f   : > { %3879 = vmatmul.mubr.msk.f32.gmra.mxu0 %vm347_vm2, %v4337_v1 }
  0x90   : > { %3835 = vmatmul.mubr.msk.f32.gmra.mxu1 %vm347_vm2, %v4238_v36  ;;  %3881 = vmatprep.mubr.msk.f32.mxu0 %vm347_vm2, %v4351_v19 }
  0x91   : > { %3837 = vmatprep.mubr.msk.f32.mxu1 %vm347_vm2, %v4275_v48 }
  0x93   : > { %3882 = vmatmul.mubr.msk.f32.gmra.mxu0 %vm347_vm2, %v4374_v38 }
  0x94   : > { %3838 = vmatmul.mubr.msk.f32.gmra.mxu1 %vm347_vm2, %v4286_v50  ;;  %3884 = vmatprep.mubr.msk.f32.mxu0 %vm347_vm2, %v5898_v16  ;;  %v4794_v16 = vsel %vm287_vm1, %v5900_v8, %v1467_v37  ;;  %v5901_v8 = vrot.slane %v4457_v56, 4 }
  0x95   : > { %3840 = vmatprep.mubr.msk.f32.mxu1 %vm347_vm2, %v4316_v60 }
  0x97   : > { %3885 = vmatmul.mubr.msk.f32.gmra.mxu0 %vm347_vm2, %v5899_v33 }
  0x98   : > { %3841 = vmatmul.mubr.msk.f32.gmra.mxu1 %vm347_vm2, %v4324_v62  ;;  %3887 = vmatprep.mubr.msk.f32.mxu0 %vm347_vm2, %v4408_v10  ;;  %v4805_v10 = vsel %vm287_vm1, %v1467_v37, %v1469_v13  ;;  %v5902_v37 = vld [vmem:[#allocation5_spill] sm:$0xff] }
  0x99   : > { %3843 = vmatprep.mubr.msk.f32.mxu1 %vm347_vm2, %v4348_v15 }
  0x9b   : > { %3888 = vmatmul.mubr.msk.f32.gmra.mxu0 %vm347_vm2, %v4427_v35 }
  0x9c   : > { %3844 = vmatmul.mubr.msk.f32.gmra.mxu1 %vm347_vm2, %v4360_v22  ;;  %3890 = vmatprep.mubr.msk.f32.mxu0 %vm347_vm2, %v4794_v16 }
  0x9d   : > { %3846 = vmatprep.mubr.msk.f32.mxu1 %vm347_vm2, %v4385_v52 }
  0x9f   : > { %3891 = vmatmul.mubr.msk.f32.gmra.mxu0 %vm347_vm2, %v4805_v10 }
  0xa0   : > { %3847 = vmatmul.mubr.msk.f32.gmra.mxu1 %vm347_vm2, %v4768_v11  ;;  %3939 = vmatprep.mubr.msk.f32.mxu0 %vm347_vm2, %v4192_v18  ;;  %v5903_v18 = vld [vmem:[#allocation6_spill] sm:$0xff] }
  0xa1   : > { %3895 = vmatprep.mubr.msk.f32.mxu1 %vm347_vm2, %v4444_v0  ;;  %v5905_v0 = vld [vmem:[#allocation8_spill] sm:$0xff] }
  0xa3   : > { %3940 = vmatmul.mubr.msk.f32.vlgmr.msra.gmra.mxu0 %vm347_vm2, %v4202_v24  ;;  %v5904_v24 = vld [vmem:[#allocation7_spill] sm:$0xff] }
  0xa4   : > { %3896 = vmatmul.mubr.msk.f32.vlgmr.msra.gmra.mxu1 %vm347_vm2, %v4451_v6  ;;  %4026 = vmatpush3.msk.msra.mxu0 %vm404_vm0, %v4681_v44 }
  0xa5   : > { %3982 = vmatpush3.msk.msra.mxu1 %vm404_vm0, %v5901_v8  ;;  %3898 = vmatprep.mubr.msk.f32.mxu1 %vm347_vm2, %v5902_v37 }
  0xa6   : > { %3942 = vmatprep.mubr.msk.f32.mxu0 %vm347_vm2, %v4219_v30  ;;  %v5906_v30 = vld [vmem:[#allocation9_spill] sm:$0xff] }
  0xa7   : > { %3943 = vmatmul.mubr.msk.f32.gmra.mxu0 %vm347_vm2, %v4225_v32  ;;  %v5907_v32 = vld [vmem:[#allocation10_spill] sm:$0xff] }
  0xa8   : > { %3899 = vmatmul.mubr.msk.f32.gmra.mxu1 %vm347_vm2, %v5903_v18  ;;  %3945 = vmatprep.mubr.msk.f32.mxu0 %vm347_vm2, %v4266_v45  ;;  %v5908_v45 = vld [vmem:[#allocation11_spill] sm:$0xff] }
  0xa9   : > { %3901 = vmatprep.mubr.msk.f32.mxu1 %vm347_vm2, %v5904_v24 }
  0xab   : > { %3946 = vmatmul.mubr.msk.f32.gmra.mxu0 %vm347_vm2, %v4278_v49  ;;  %v5909_v49 = vld [vmem:[#allocation12_spill] sm:$0xff] }
  0xac   : > { %3902 = vmatmul.mubr.msk.f32.gmra.mxu1 %vm347_vm2, %v5905_v0  ;;  %3948 = vmatprep.mubr.msk.f32.mxu0 %vm347_vm2, %v4309_v57  ;;  %v5910_v57 = vld [vmem:[#allocation13_spill] sm:$0xff] }
  0xad   : > { %3904 = vmatprep.mubr.msk.f32.mxu1 %vm347_vm2, %v5906_v30 }
  0xaf   : > { %3949 = vmatmul.mubr.msk.f32.gmra.mxu0 %vm347_vm2, %v4319_v61  ;;  %v5911_v61 = vld [vmem:[#allocation14_spill] sm:$0xff] }
  0xb0   : > { %3905 = vmatmul.mubr.msk.f32.gmra.mxu1 %vm347_vm2, %v5907_v32  ;;  %3951 = vmatprep.mubr.msk.f32.mxu0 %vm347_vm2, %v4345_v14  ;;  %v5912_v14 = vld [vmem:[#allocation15_spill] sm:$0xff] }
  0xb1   : > { %3907 = vmatprep.mubr.msk.f32.mxu1 %vm347_vm2, %v5908_v45 }
  0xb3   : > { %3952 = vmatmul.mubr.msk.f32.gmra.mxu0 %vm347_vm2, %v4355_v21  ;;  %v5913_v21 = vld [vmem:[#allocation16_spill] sm:$0xff] }
  0xb4   : > { %3908 = vmatmul.mubr.msk.f32.gmra.mxu1 %vm347_vm2, %v5909_v49  ;;  %3954 = vmatprep.mubr.msk.f32.mxu0 %vm347_vm2, %v4167_v5  ;;  %v5914_v5 = vld [vmem:[#allocation17_spill] sm:$0xff] }
  0xb5   : > { %3910 = vmatprep.mubr.msk.f32.mxu1 %vm347_vm2, %v5910_v57 }
  0xb7   : > { %3955 = vmatmul.mubr.msk.f32.gmra.mxu0 %vm347_vm2, %v4173_v9  ;;  %v5915_v9 = vld [vmem:[#allocation18_spill] sm:$0xff] }
  0xb8   : > { %3911 = vmatmul.mubr.msk.f32.gmra.mxu1 %vm347_vm2, %v5911_v61  ;;  %3957 = vmatprep.mubr.msk.f32.mxu0 %vm347_vm2, %v4180_v12  ;;  %v5916_v12 = vld [vmem:[#allocation19_spill] sm:$0xff] }
  0xb9   : > { %3913 = vmatprep.mubr.msk.f32.mxu1 %vm347_vm2, %v5912_v14 }
  0xbb   : > { %3958 = vmatmul.mubr.msk.f32.gmra.mxu0 %vm347_vm2, %v4189_v17  ;;  %v5917_v17 = vld [vmem:[#allocation20_spill] sm:$0xff] }
  0xbc   : > { %3914 = vmatmul.mubr.msk.f32.gmra.mxu1 %vm347_vm2, %v5913_v21  ;;  %3960 = vmatprep.mubr.msk.f32.mxu0 %vm347_vm2, %v4199_v23  ;;  %v5918_v23 = vld [vmem:[#allocation21_spill] sm:$0xff] }
  0xbd   : > { %3916 = vmatprep.mubr.msk.f32.mxu1 %vm347_vm2, %v5914_v5 }
  0xbf   : > { %3961 = vmatmul.mubr.msk.f32.gmra.mxu0 %vm347_vm2, %v4205_v25  ;;  %v5919_v25 = vld [vmem:[#allocation22_spill] sm:$0xff] }
  0xc0   : > { %3917 = vmatmul.mubr.msk.f32.gmra.mxu1 %vm347_vm2, %v5915_v9  ;;  %3963 = vmatprep.mubr.msk.f32.mxu0 %vm347_vm2, %v4222_v31  ;;  %v1711_v31 = vrot.slane %v4768_v11, 2 }
  0xc1   : > { %3919 = vmatprep.mubr.msk.f32.mxu1 %vm347_vm2, %v5916_v12 }
  0xc3   : > { %3964 = vmatmul.mubr.msk.f32.gmra.mxu0 %vm347_vm2, %v4238_v36  ;;  %v1713_v36 = vrot.slane %v4780_v40, 2 }
  0xc4   : > { %3920 = vmatmul.mubr.msk.f32.gmra.mxu1 %vm347_vm2, %v5917_v17  ;;  %3966 = vmatprep.mubr.msk.f32.mxu0 %vm347_vm2, %v4275_v48  ;;  %v5920_v48 = vrot.slane %v4385_v52, 2 }
  0xc5   : > { %3922 = vmatprep.mubr.msk.f32.mxu1 %vm347_vm2, %v5918_v23 }
  0xc7   : > { %3967 = vmatmul.mubr.msk.f32.gmra.mxu0 %vm347_vm2, %v4286_v50  ;;  %v4923_v50 = vsel %vm875_vm3, %v5920_v48, %v1711_v31 }
  0xc8   : > { %3923 = vmatmul.mubr.msk.f32.gmra.mxu1 %vm347_vm2, %v4610_v43  ;;  %3969 = vmatprep.mubr.msk.f32.mxu0 %vm347_vm2, %v4316_v60  ;;  %v4932_v60 = vld [vmem:[%s4158_s28 + $0xf8] sm:$0xff] }
  0xc9   : > { %3925 = vmatprep.mubr.msk.f32.mxu1 %vm347_vm2, %v5919_v25 }
  0xcb   : > { %3970 = vmatmul.mubr.msk.f32.gmra.mxu0 %vm347_vm2, %v4324_v62  ;;  %v4939_v62 = vsel %vm875_vm3, %v1711_v31, %v1713_v36 }
  0xcc   : > { %3926 = vmatmul.mubr.msk.f32.gmra.mxu1 %vm347_vm2, %v4626_v4  ;;  %3972 = vmatprep.mubr.msk.f32.mxu0 %vm347_vm2, %v4348_v15 }
  0xcd   : > { %3928 = vmatprep.mubr.msk.f32.mxu1 %vm347_vm2, %v4632_v3 }
  0xcf   : > { %3973 = vmatmul.mubr.msk.f32.gmra.mxu0 %vm347_vm2, %v4360_v22 }
  0xd0   : > { %3929 = vmatmul.mubr.msk.f32.gmra.mxu1 %vm347_vm2, %v4642_v2  ;;  %3975 = vmatprep.mubr.msk.f32.mxu0 %vm347_vm2, %v4385_v52 }
  0xd1   : > { %3931 = vmatprep.mubr.msk.f32.mxu1 %vm347_vm2, %v4648_v29 }
  0xd3   : > { %3976 = vmatmul.mubr.msk.f32.gmra.mxu0 %vm347_vm2, %v4768_v11 }
  0xd4   : > { %3932 = vmatmul.mubr.msk.f32.gmra.mxu1 %vm347_vm2, %v4659_v47  ;;  %3978 = vmatprep.mubr.msk.f32.mxu0 %vm347_vm2, %v4780_v40 }
  0xd5   : > { %3934 = vmatprep.mubr.msk.f32.mxu1 %vm347_vm2, %v4923_v50 }
  0xd7   : > { %v3677_v15 = vpop.f32.mrf.mxu0  ;;  %3979 = vmatmul.mubr.msk.f32.gmra.mxu0 %vm347_vm2, %v4932_v60 }
  0xd8   : > { %v4943_v22 = vpop.f32.mrf.mxu1  ;;  %3935 = vmatmul.mubr.msk.f32.gmra.mxu1 %vm347_vm2, %v4939_v62  ;;  %4027 = vmatprep.mubr.msk.f32.mxu0 %vm347_vm2, %v5902_v37 }
  0xd9   : > { %v473_v52 = vpop.f32.mrf.mxu0  ;;  %3983 = vmatprep.mubr.msk.f32.mxu1 %vm347_vm2, %v4261_v42 }
  0xda   : > { %v4951_v6 = vpop.f32.mrf.mxu1 }
  0xdb   : > { %v4953_v56 = vpop.f32.mrf.mxu0  ;;  %4028 = vmatmul.mubr.msk.f32.vlgmr.msra.gmra.mxu0 %vm347_vm2, %v5903_v18 }
  0xdc   : > { %v4957_v44 = vpop.f32.mrf.mxu1  ;;  %3984 = vmatmul.mubr.msk.f32.vlgmr.msra.gmra.mxu1 %vm347_vm2, %v4295_v51  ;;  %4030 = vmatprep.mubr.msk.f32.mxu0 %vm347_vm2, %v5904_v24 }
  0xdd   : > { %v4963_v11 = vpop.f32.mrf.mxu0  ;;  %3986 = vmatprep.mubr.msk.f32.mxu1 %vm347_vm2, %v4304_v54 }
  0xde   : > { %v4967_v42 = vpop.f32.mrf.mxu1 }
  0xdf   : > { %v4969_v8 = vpop.f32.mrf.mxu0  ;;  %4031 = vmatmul.mubr.msk.f32.gmra.mxu0 %vm347_vm2, %v5905_v0 }
  0xe0   : > { %v4973_v37 = vpop.f32.mrf.mxu1  ;;  %3987 = vmatmul.mubr.msk.f32.gmra.mxu1 %vm347_vm2, %v4331_v63  ;;  %4033 = vmatprep.mubr.msk.f32.mxu0 %vm347_vm2, %v5906_v30 }
  0xe1   : > { %v4979_v51 = vpop.f32.mrf.mxu0  ;;  %3989 = vmatprep.mubr.msk.f32.mxu1 %vm347_vm2, %v4340_v7 }
  0xe2   : > { %v4983_v54 = vpop.f32.mrf.mxu1 }
  0xe3   : > { %v4985_v18 = vpop.f32.mrf.mxu0  ;;  %4034 = vmatmul.mubr.msk.f32.gmra.mxu0 %vm347_vm2, %v5907_v32 }
  0xe4   : > { %v4989_v24 = vpop.f32.mrf.mxu1  ;;  %3990 = vmatmul.mubr.msk.f32.gmra.mxu1 %vm347_vm2, %v4367_v27  ;;  %4036 = vmatprep.mubr.msk.f32.mxu0 %vm347_vm2, %v5908_v45 }
  0xe5   : > { %v4995_v63 = vpop.f32.mrf.mxu0  ;;  %3992 = vmatprep.mubr.msk.f32.mxu1 %vm347_vm2, %v4377_v39 }
  0xe6   : > { %v4999_v7 = vpop.f32.mrf.mxu1 }
  0xe7   : > { %v5001_v0 = vpop.f32.mrf.mxu0  ;;  %4037 = vmatmul.mubr.msk.f32.gmra.mxu0 %vm347_vm2, %v5909_v49 }
  0xe8   : > { %v5005_v30 = vpop.f32.mrf.mxu1  ;;  %3993 = vmatmul.mubr.msk.f32.gmra.mxu1 %vm347_vm2, %v4394_v55  ;;  %4039 = vmatprep.mubr.msk.f32.mxu0 %vm347_vm2, %v5910_v57 }
  0xe9   : > { %v5011_v27 = vpop.f32.mrf.mxu0  ;;  %3995 = vmatprep.mubr.msk.f32.mxu1 %vm347_vm2, %v4402_v59 }
  0xea   : > { %v5015_v39 = vpop.f32.mrf.mxu1 }
  0xeb   : > { %v5017_v32 = vpop.f32.mrf.mxu0  ;;  %4040 = vmatmul.mubr.msk.f32.gmra.mxu0 %vm347_vm2, %v5911_v61 }
  0xec   : > { %v5021_v45 = vpop.f32.mrf.mxu1  ;;  %3996 = vmatmul.mubr.msk.f32.gmra.mxu1 %vm347_vm2, %v4419_v20  ;;  %4042 = vmatprep.mubr.msk.f32.mxu0 %vm347_vm2, %v5912_v14 }
  0xed   : > { %v5027_v55 = vpop.f32.mrf.mxu0  ;;  %3998 = vmatprep.mubr.msk.f32.mxu1 %vm347_vm2, %v4211_v26 }
  0xee   : > { %v5031_v59 = vpop.f32.mrf.mxu1 }
  0xef   : > { %v5033_v49 = vpop.f32.mrf.mxu0  ;;  %4043 = vmatmul.mubr.msk.f32.gmra.mxu0 %vm347_vm2, %v5913_v21 }
  0xf0   : > { %v5037_v57 = vpop.f32.mrf.mxu1  ;;  %3999 = vmatmul.mubr.msk.f32.gmra.mxu1 %vm347_vm2, %v4215_v28  ;;  %4045 = vmatprep.mubr.msk.f32.mxu0 %vm347_vm2, %v5914_v5 }
  0xf1   : > { %v5043_v20 = vpop.f32.mrf.mxu0  ;;  %4001 = vmatprep.mubr.msk.f32.mxu1 %vm347_vm2, %v4234_v34 }
  0xf2   : > { %v5047_v26 = vpop.f32.mrf.mxu1 }
  0xf3   : > { %v3765_v61 = vpop.f32.mrf.mxu0  ;;  %4046 = vmatmul.mubr.msk.f32.gmra.mxu0 %vm347_vm2, %v5915_v9 }
  0xf4   : > { %v3721_v14 = vpop.f32.mrf.mxu1  ;;  %4002 = vmatmul.mubr.msk.f32.gmra.mxu1 %vm347_vm2, %v4258_v41  ;;  %4048 = vmatprep.mubr.msk.f32.mxu0 %vm347_vm2, %v5916_v12 }
  0xf5   : > { %v742_v28 = vadd.f32 %v3721_v14, %v3677_v15  ;;  %v1058_v21 = vpop.f32.mrf.mxu0  ;;  %4004 = vmatprep.mubr.msk.f32.mxu1 %vm347_vm2, %v4271_v46 }
  0xf6   : > { %v736_v5 = vpop.f32.mrf.mxu1 }
  0xf7   : > { %v5057_v34 = vadd.f32 %v3765_v61, %v742_v28  ;;  %v737_v31 = vadd.f32 %v736_v5, %v473_v52  ;;  %v3768_v48 = vpop.f32.mrf.mxu0  ;;  %4049 = vmatmul.mubr.msk.f32.gmra.mxu0 %vm347_vm2, %v5917_v17 }
  0xf8   : > { %v3724_v9 = vpop.f32.mrf.mxu1  ;;  %4005 = vmatmul.mubr.msk.f32.gmra.mxu1 %vm347_vm2, %v4301_v53  ;;  %4051 = vmatprep.mubr.msk.f32.mxu0 %vm347_vm2, %v5918_v23 }
  0xf9   : > { %v5065_v41 = vadd.f32 %v1058_v21, %v737_v31  ;;  %v752_v12 = vadd.f32 %v3724_v9, %v4953_v56  ;;  %v1068_v46 = vpop.f32.mrf.mxu0  ;;  %4007 = vmatprep.mubr.msk.f32.mxu1 %vm347_vm2, %v4312_v58  ;;  %v5921_v21 = vld [vmem:[#allocation2_spill] sm:$0xff] }
  0xfa   : > { %v746_v15 = vpop.f32.mrf.mxu1 }
  0xfb   : > { %v5070_v52 = vadd.f32 %v3768_v48, %v752_v12  ;;  %v747_v17 = vadd.f32 %v746_v15, %v4963_v11  ;;  %v3771_v61 = vpop.f32.mrf.mxu0  ;;  %4052 = vmatmul.mubr.msk.f32.gmra.mxu0 %vm347_vm2, %v4610_v43  ;;  %v5922_v12 = vld [vmem:[#allocation4_spill] sm:$0xff] }
  0xfc   : > { %v3727_v53 = vpop.f32.mrf.mxu1  ;;  %4008 = vmatmul.mubr.msk.f32.gmra.mxu1 %vm347_vm2, %v4337_v1  ;;  %4054 = vmatprep.mubr.msk.f32.mxu0 %vm347_vm2, %v5919_v25 }
  0xfd   : > { %v5079_v23 = vadd.f32 %v1068_v46, %v747_v17  ;;  %v762_v58 = vadd.f32 %v3727_v53, %v4969_v8  ;;  %v1078_v56 = vpop.f32.mrf.mxu0  ;;  %4010 = vmatprep.mubr.msk.f32.mxu1 %vm347_vm2, %v4351_v19 }
  0xfe   : > { %v756_v11 = vpop.f32.mrf.mxu1 }
  0xff   : > { %v5084_v14 = vadd.f32 %v3771_v61, %v762_v58  ;;  %v757_v43 = vadd.f32 %v756_v11, %v4979_v51  ;;  %v3774_v28 = vpop.f32.mrf.mxu0  ;;  %4055 = vmatmul.mubr.msk.f32.gmra.mxu0 %vm347_vm2, %v4626_v4 }
 0x100   : > { %v3730_v1 = vpop.f32.mrf.mxu1  ;;  %4011 = vmatmul.mubr.msk.f32.gmra.mxu1 %vm347_vm2, %v4374_v38  ;;  %4057 = vmatprep.mubr.msk.f32.mxu0 %vm347_vm2, %v4632_v3  ;;  %v2441_v3 = vrot.slane %v4932_v60, 2 }
 0x101   : > { %v5093_v25 = vadd.f32 %v1078_v56, %v757_v43  ;;  %v772_v19 = vadd.f32 %v3730_v1, %v4985_v18  ;;  %v1088_v8 = vpop.f32.mrf.mxu0  ;;  %4013 = vmatprep.mubr.msk.f32.mxu1 %vm347_vm2, %v5921_v21 }
 0x102   : > { %v766_v51 = vpop.f32.mrf.mxu1 }
 0x103   : > { %v5098_v5 = vadd.f32 %v3774_v28, %v772_v19  ;;  %v767_v4 = vadd.f32 %v766_v51, %v4995_v63  ;;  %v3777_v31 = vpop.f32.mrf.mxu0  ;;  %4058 = vmatmul.mubr.msk.f32.gmra.mxu0 %vm347_vm2, %v4642_v2  ;;  %v252_v63 = vld [vmem:[%s4158_s28 + $0x100] sm:$0xff]  ;;  %v2197_v2 = vrot.slane %v4932_v60, 1 }
 0x104   : > { %v3733_v38 = vpop.f32.mrf.mxu1  ;;  %4014 = vmatmul.mubr.msk.f32.gmra.mxu1 %vm347_vm2, %v5899_v33  ;;  %4060 = vmatprep.mubr.msk.f32.mxu0 %vm347_vm2, %v4648_v29 }
 0x105   : > { %v5108_v18 = vadd.f32 %v1088_v8, %v767_v4  ;;  %v782_v48 = vadd.f32 %v3733_v38, %v5001_v0  ;;  %v1098_v9 = vpop.f32.mrf.mxu0  ;;  %4016 = vmatprep.mubr.msk.f32.mxu1 %vm347_vm2, %v5922_v12  ;;  %v2443_v0 = vrot.slane %v252_v63, 2 }
 0x106   : > { %v776_v46 = vpop.f32.mrf.mxu1 }
 0x107   : > { %v5115_v15 = vadd.f32 %v3777_v31, %v782_v48  ;;  %v777_v33 = vadd.f32 %v776_v46, %v5011_v27  ;;  %v3780_v17 = vpop.f32.mrf.mxu0  ;;  %4061 = vmatmul.mubr.msk.f32.gmra.mxu0 %vm347_vm2, %v4659_v47  ;;  %v2442_v47 = vsel %vm875_vm3, %v1713_v36, %v2441_v3  ;;  %v2199_v27 = vrot.slane %v252_v63, 1 }
 0x108   : > { %v3736_v29 = vpop.f32.mrf.mxu1  ;;  %4017 = vmatmul.mubr.msk.f32.gmra.mxu1 %vm347_vm2, %v4427_v35  ;;  %4063 = vmatprep.mubr.msk.f32.mxu0 %vm347_vm2, %v4923_v50  ;;  %v2198_v35 = vsel %vm287_vm1, %v1469_v13, %v2197_v2 }
 0x109   : > { %v5124_v61 = vadd.f32 %v1098_v9, %v777_v33  ;;  %v792_v60 = vadd.f32 %v3736_v29, %v5017_v32  ;;  %v1108_v53 = vpop.f32.mrf.mxu0  ;;  %4019 = vmatprep.mubr.msk.f32.mxu1 %vm347_vm2, %v4794_v16  ;;  %v2444_v16 = vsel %vm875_vm3, %v2441_v3, %v2443_v0 }
 0x10a   : > { %v786_v58 = vpop.f32.mrf.mxu1 }
 0x10b   : > { %v5135_v50 = vadd.f32 %v3780_v17, %v792_v60  ;;  %v787_v56 = vadd.f32 %v786_v58, %v5027_v55  ;;  %v3783_v11 = vpop.f32.mrf.mxu0  ;;  %4064 = vmatmul.mubr.msk.f32.gmra.mxu0 %vm347_vm2, %v4939_v62  ;;  %v2200_v55 = vsel %vm287_vm1, %v2197_v2, %v2199_v27 }
 0x10c   : > { %v3739_v32 = vpop.f32.mrf.mxu1  ;;  %4020 = vmatmul.mubr.msk.f32.gmra.mxu1 %vm347_vm2, %v4805_v10  ;;  %4066 = vmatprep.mubr.msk.f32.mxu0 %vm347_vm2, %v2442_v47 }
 0x10d   : > { %v5144_v36 = vadd.f32 %v1108_v53, %v787_v56  ;;  %v802_v13 = vadd.f32 %v3739_v32, %v5033_v49  ;;  %v1118_v40 = vpop.f32.mrf.mxu0  ;;  %4022 = vmatprep.mubr.msk.f32.mxu1 %vm347_vm2, %v2198_v35 }
 0x10e   : > { %v796_v43 = vpop.f32.mrf.mxu1 }
 0x10f   : > { %v5149_v28 = vadd.f32 %v3783_v11, %v802_v13  ;;  %v797_v62 = vadd.f32 %v796_v43, %v5043_v20  ;;  %v3786_v1 = vpop.f32.mrf.mxu0  ;;  %4067 = vmatmul.mubr.msk.f32.gmra.mxu0 %vm347_vm2, %v2444_v16 }
 0x110   : > { %v3742_v10 = vpop.f32.mrf.mxu1  ;;  %4023 = vmatmul.mubr.msk.f32.gmra.mxu1 %vm347_vm2, %v2200_v55 }
 0x111   : > { %v5154_v19 = vadd.f32 %v1118_v40, %v797_v62  ;;  %v812_v49 = vadd.f32 %v3742_v10, %v4943_v22  ;;  %v1128_v8 = vpop.f32.mrf.mxu0 }
 0x112   : > { %v806_v21 = vpop.f32.mrf.mxu1 }
 0x113   : > { %v5157_v51 = vadd.f32 %v3786_v1, %v812_v49  ;;  %v807_v4 = vadd.f32 %v806_v21, %v4951_v6  ;;  %v3789_v31 = vpop.f32.mrf.mxu0 }
 0x114   : > { %v3745_v38 = vpop.f32.mrf.mxu1 }
 0x115   : > { %v5160_v3 = vadd.f32 %v1128_v8, %v807_v4  ;;  %v822_v20 = vadd.f32 %v3745_v38, %v4957_v44  ;;  %v1138_v48 = vpop.f32.mrf.mxu0 }
 0x116   : > { %v816_v9 = vpop.f32.mrf.mxu1 }
 0x117   : > { %v5163_v12 = vadd.f32 %v3789_v31, %v822_v20  ;;  %v817_v63 = vadd.f32 %v816_v9, %v4967_v42  ;;  %v3792_v2 = vpop.f32.mrf.mxu0 }
 0x118   : > { %v3748_v22 = vpop.f32.mrf.mxu1 }
 0x119   : > { %v5166_v46 = vadd.f32 %v1138_v48, %v817_v63  ;;  %v832_v33 = vadd.f32 %v3748_v22, %v4973_v37  ;;  %v1148_v17 = vpop.f32.mrf.mxu0 }
 0x11a   : > { %v826_v6 = vpop.f32.mrf.mxu1 }
 0x11b   : > { %v5169_v29 = vadd.f32 %v3792_v2, %v832_v33  ;;  %v827_v0 = vadd.f32 %v826_v6, %v4983_v54  ;;  %v3795_v60 = vpop.f32.mrf.mxu0 }
 0x11c   : > { %v3751_v44 = vpop.f32.mrf.mxu1 }
 0x11d   : > { %v5172_v53 = vadd.f32 %v1148_v17, %v827_v0  ;;  %v842_v47 = vadd.f32 %v3751_v44, %v4989_v24  ;;  %v1158_v27 = vpop.f32.mrf.mxu0 }
 0x11e   : > { %v836_v42 = vpop.f32.mrf.mxu1 }
 0x11f   : > { %v5175_v58 = vadd.f32 %v3795_v60, %v842_v47  ;;  %v837_v35 = vadd.f32 %v836_v42, %v4999_v7  ;;  %v3798_v56 = vpop.f32.mrf.mxu0 }
 0x120   : > { %v3754_v37 = vpop.f32.mrf.mxu1 }
 0x121   : > { %v5178_v11 = vadd.f32 %v1158_v27, %v837_v35  ;;  %v852_v32 = vadd.f32 %v3754_v37, %v5005_v30  ;;  %v1168_v16 = vpop.f32.mrf.mxu0 }
 0x122   : > { %v846_v54 = vpop.f32.mrf.mxu1 }
 0x123   : > { %v5181_v13 = vadd.f32 %v3798_v56, %v852_v32  ;;  %v847_v40 = vadd.f32 %v846_v54, %v5015_v39  ;;  %v3801_v55 = vpop.f32.mrf.mxu0 }
 0x124   : > { %v3757_v24 = vpop.f32.mrf.mxu1 }
 0x125   : > { %v5184_v43 = vadd.f32 %v1168_v16, %v847_v40  ;;  %v862_v62 = vadd.f32 %v3757_v24, %v5021_v45  ;;  %v1178_v1 = vpop.f32.mrf.mxu0 }
 0x126   : > { %v856_v7 = vpop.f32.mrf.mxu1 }
 0x127   : > { %v5187_v10 = vadd.f32 %v3801_v55, %v862_v62  ;;  %v857_v49 = vadd.f32 %v856_v7, %v5031_v59  ;;  %v3804_v8 = vpop.f32.mrf.mxu0 }
 0x128   : > { %v3760_v30 = vpop.f32.mrf.mxu1 }
 0x129   : > { %v5190_v21 = vadd.f32 %v1178_v1, %v857_v49  ;;  %v872_v4 = vadd.f32 %v3760_v30, %v5037_v57  ;;  %v1188_v31 = vpop.f32.mrf.mxu0 }
 0x12a   : > { %v866_v39 = vpop.f32.mrf.mxu1 }
 0x12b   : > { %v5193_v38 = vadd.f32 %v3804_v8, %v872_v4  ;;  %v867_v20 = vadd.f32 %v866_v39, %v5047_v26  ;;  %v3853_v48 = vpop.f32.mrf.mxu0 }
 0x12c   : > { %v3809_v45 = vpop.f32.mrf.mxu1 }
 0x12d   : > { %v5196_v9 = vadd.f32 %v1188_v31, %v867_v20  ;;  %v1439_v63 = vadd.f32 %v3809_v45, %v5057_v34  ;;  %v1544_v2 = vpop.f32.mrf.mxu0 }
 0x12e   : > { %v1299_v59 = vpop.f32.mrf.mxu1 }
 0x12f   : > { %v5199_v22 = vadd.f32 %v3853_v48, %v1439_v63  ;;  %v1438_v33 = vadd.f32 %v1299_v59, %v5065_v41  ;;  %v3856_v17 = vpop.f32.mrf.mxu0 }
 0x130   : > { %v3812_v57 = vpop.f32.mrf.mxu1 }
 0x131   : > { %v5202_v6 = vadd.f32 %v1544_v2, %v1438_v33  ;;  %v1441_v0 = vadd.f32 %v3812_v57, %v5070_v52  ;;  %v1554_v60 = vpop.f32.mrf.mxu0 }
 0x132   : > { %v1309_v26 = vpop.f32.mrf.mxu1 }
 0x133   : > { %v5205_v44 = vadd.f32 %v3856_v17, %v1441_v0  ;;  %v1440_v47 = vadd.f32 %v1309_v26, %v5079_v23  ;;  %v3859_v27 = vpop.f32.mrf.mxu0 }
 0x134   : > { %v3815_v34 = vpop.f32.mrf.mxu1 }
 0x135   : > { %v5208_v42 = vadd.f32 %v1554_v60, %v1440_v47  ;;  %v1443_v35 = vadd.f32 %v3815_v34, %v5084_v14  ;;  %v1564_v56 = vpop.f32.mrf.mxu0 }
 0x136   : > { %v1319_v41 = vpop.f32.mrf.mxu1 }
 0x137   : > { %v5211_v37 = vadd.f32 %v3859_v27, %v1443_v35  ;;  %v1442_v32 = vadd.f32 %v1319_v41, %v5093_v25  ;;  %v3862_v16 = vpop.f32.mrf.mxu0 }
 0x138   : > { %v3818_v52 = vpop.f32.mrf.mxu1 }
 0x139   : > { %v5214_v54 = vadd.f32 %v1564_v56, %v1442_v32  ;;  %v1445_v40 = vadd.f32 %v3818_v52, %v5098_v5  ;;  %v1574_v55 = vpop.f32.mrf.mxu0 }
 0x13a   : > { %v1329_v23 = vpop.f32.mrf.mxu1 }
 0x13b   : > { %v5217_v24 = vadd.f32 %v3862_v16, %v1445_v40  ;;  %v1444_v62 = vadd.f32 %v1329_v23, %v5108_v18  ;;  %v3865_v1 = vpop.f32.mrf.mxu0 }
 0x13c   : > { %v3821_v14 = vpop.f32.mrf.mxu1 }
 0x13d   : > { %v5220_v7 = vadd.f32 %v1574_v55, %v1444_v62  ;;  %v1447_v49 = vadd.f32 %v3821_v14, %v5115_v15  ;;  %v1584_v8 = vpop.f32.mrf.mxu0 }
 0x13e   : > { %v1339_v25 = vpop.f32.mrf.mxu1 }
 0x13f   : > { %v5223_v30 = vadd.f32 %v3865_v1, %v1447_v49  ;;  %v1446_v4 = vadd.f32 %v1339_v25, %v5124_v61  ;;  %v3868_v31 = vpop.f32.mrf.mxu0 }
 0x140   : > { %v3824_v5 = vpop.f32.mrf.mxu1 }
 0x141   : > { %v5226_v39 = vadd.f32 %v1584_v8, %v1446_v4  ;;  %v1449_v20 = vadd.f32 %v3824_v5, %v5135_v50  ;;  %v1594_v48 = vpop.f32.mrf.mxu0 }
 0x142   : > { %v1349_v18 = vpop.f32.mrf.mxu1 }
 0x143   : > { %v5229_v45 = vadd.f32 %v3868_v31, %v1449_v20  ;;  %v1448_v63 = vadd.f32 %v1349_v18, %v5144_v36  ;;  %v3871_v2 = vpop.f32.mrf.mxu0 }
 0x144   : > { %v3827_v15 = vpop.f32.mrf.mxu1 }
 0x145   : > { %v5232_v59 = vadd.f32 %v1594_v48, %v1448_v63  ;;  %v1451_v33 = vadd.f32 %v3827_v15, %v5149_v28  ;;  %v1604_v17 = vpop.f32.mrf.mxu0 }
 0x146   : > { %v1359_v61 = vpop.f32.mrf.mxu1 }
 0x147   : > { %v5235_v57 = vadd.f32 %v3871_v2, %v1451_v33  ;;  %v1450_v0 = vadd.f32 %v1359_v61, %v5154_v19  ;;  %v3874_v60 = vpop.f32.mrf.mxu0 }
 0x148   : > { %v3830_v50 = vpop.f32.mrf.mxu1 }
 0x149   : > { %v5238_v26 = vadd.f32 %v1604_v17, %v1450_v0  ;;  %v1453_v47 = vadd.f32 %v3830_v50, %v5157_v51  ;;  %v1614_v27 = vpop.f32.mrf.mxu0 }
 0x14a   : > { %v1369_v36 = vpop.f32.mrf.mxu1 }
 0x14b   : > { %v5241_v34 = vadd.f32 %v3874_v60, %v1453_v47  ;;  %v1452_v35 = vadd.f32 %v1369_v36, %v5160_v3  ;;  %v3877_v56 = vpop.f32.mrf.mxu0 }
 0x14c   : > { %v3833_v28 = vpop.f32.mrf.mxu1 }
 0x14d   : > { %v5244_v41 = vadd.f32 %v1614_v27, %v1452_v35  ;;  %v1455_v32 = vadd.f32 %v3833_v28, %v5163_v12  ;;  %v1624_v16 = vpop.f32.mrf.mxu0 }
 0x14e   : > { %v1379_v19 = vpop.f32.mrf.mxu1 }
 0x14f   : > { %v5247_v52 = vadd.f32 %v3877_v56, %v1455_v32  ;;  %v1454_v40 = vadd.f32 %v1379_v19, %v5166_v46  ;;  %v3880_v55 = vpop.f32.mrf.mxu0 }
 0x150   : > { %v3836_v51 = vpop.f32.mrf.mxu1 }
 0x151   : > { %v5250_v23 = vadd.f32 %v1624_v16, %v1454_v40  ;;  %v1457_v62 = vadd.f32 %v3836_v51, %v5169_v29  ;;  %v1634_v1 = vpop.f32.mrf.mxu0 }
 0x152   : > { %v1389_v3 = vpop.f32.mrf.mxu1 }
 0x153   : > { %v5253_v14 = vadd.f32 %v3880_v55, %v1457_v62  ;;  %v1456_v49 = vadd.f32 %v1389_v3, %v5172_v53  ;;  %v3883_v8 = vpop.f32.mrf.mxu0 }
 0x154   : > { %v3839_v12 = vpop.f32.mrf.mxu1 }
 0x155   : > { %5923 = vst [vmem:[#allocation3_spill] sm:$0xff] %v5253_v14  ;;  %v5256_v25 = vadd.f32 %v1634_v1, %v1456_v49  ;;  %v1459_v4 = vadd.f32 %v3839_v12, %v5175_v58  ;;  %v1644_v31 = vpop.f32.mrf.mxu0 }
 0x156   : > { %v1399_v46 = vpop.f32.mrf.mxu1 }
 0x157   : > { %5924 = vst [vmem:[#allocation5_spill] sm:$0xff] %v5256_v25  ;;  %v5259_v5 = vadd.f32 %v3883_v8, %v1459_v4  ;;  %v1458_v20 = vadd.f32 %v1399_v46, %v5178_v11  ;;  %v3886_v48 = vpop.f32.mrf.mxu0 }
 0x158   : > { %v3842_v29 = vpop.f32.mrf.mxu1 }
 0x159   : > { %5925 = vst [vmem:[#allocation6_spill] sm:$0xff] %v5259_v5  ;;  %v5262_v18 = vadd.f32 %v1644_v31, %v1458_v20  ;;  %v1461_v63 = vadd.f32 %v3842_v29, %v5181_v13  ;;  %v1654_v2 = vpop.f32.mrf.mxu0 }
 0x15a   : > { %v1409_v53 = vpop.f32.mrf.mxu1 }
 0x15b   : > { %5926 = vst [vmem:[#allocation7_spill] sm:$0xff] %v5262_v18  ;;  %v5265_v15 = vadd.f32 %v3886_v48, %v1461_v63  ;;  %v1460_v33 = vadd.f32 %v1409_v53, %v5184_v43  ;;  %v3889_v17 = vpop.f32.mrf.mxu0 }
 0x15c   : > { %v3845_v58 = vpop.f32.mrf.mxu1 }
 0x15d   : > { %5927 = vst [vmem:[#allocation8_spill] sm:$0xff] %v5265_v15  ;;  %v5268_v61 = vadd.f32 %v1654_v2, %v1460_v33  ;;  %v1463_v0 = vadd.f32 %v3845_v58, %v5187_v10  ;;  %v1664_v60 = vpop.f32.mrf.mxu0 }
 0x15e   : > { %v1419_v11 = vpop.f32.mrf.mxu1 }
 0x15f   : > { %5928 = vst [vmem:[#allocation9_spill] sm:$0xff] %v5268_v61  ;;  %v5271_v50 = vadd.f32 %v3889_v17, %v1463_v0  ;;  %v1462_v47 = vadd.f32 %v1419_v11, %v5190_v21  ;;  %v3892_v27 = vpop.f32.mrf.mxu0 }
 0x160   : > { %v3848_v13 = vpop.f32.mrf.mxu1 }
 0x161   : > { %5929 = vst [vmem:[#allocation10_spill] sm:$0xff] %v5271_v50  ;;  %v5274_v36 = vadd.f32 %v1664_v60, %v1462_v47  ;;  %v1465_v35 = vadd.f32 %v3848_v13, %v5193_v38  ;;  %v1674_v56 = vpop.f32.mrf.mxu0 }
 0x162   : > { %v1429_v43 = vpop.f32.mrf.mxu1 }
 0x163   : > { %5930 = vst [vmem:[#allocation11_spill] sm:$0xff] %v5274_v36  ;;  %v5277_v28 = vadd.f32 %v3892_v27, %v1465_v35  ;;  %v1464_v32 = vadd.f32 %v1429_v43, %v5196_v9  ;;  %v3941_v16 = vpop.f32.mrf.mxu0 }
 0x164   : > { %v3897_v10 = vpop.f32.mrf.mxu1 }
 0x165   : > { %5931 = vst [vmem:[#allocation12_spill] sm:$0xff] %v5277_v28  ;;  %v5280_v19 = vadd.f32 %v1674_v56, %v1464_v32  ;;  %v2029_v40 = vpop.f32.mrf.mxu0 }
 0x166   : > { %v1788_v55 = vpop.f32.mrf.mxu1 }
 0x167   : > { %5932 = vst [vmem:[#allocation13_spill] sm:$0xff] %v5280_v19  ;;  %v5282_v51 = vpop.f32.mrf.mxu0 }
 0x168   : > { %v3900_v21 = vpop.f32.mrf.mxu1 }
 0x169   : > { %v5284_v62 = vpop.f32.mrf.mxu0 }
 0x16a   : > { %v1798_v1 = vpop.f32.mrf.mxu1 }
 0x16b   : > { %v5286_v3 = vpop.f32.mrf.mxu0 }
 0x16c   : > { %v3903_v38 = vpop.f32.mrf.mxu1 }
 0x16d   : > { %v5288_v49 = vpop.f32.mrf.mxu0 }
 0x16e   : > { %v5290_v8 = vpop.f32.mrf.mxu1 }
 0x16f   : > { %v5292_v9 = vpop.f32.mrf.mxu0 }
 0x170   : > { %v5294_v12 = vpop.f32.mrf.mxu1 }
 0x171   : > { %v5296_v4 = vpop.f32.mrf.mxu0 }
 0x172   : > { %v5298_v31 = vpop.f32.mrf.mxu1 }
 0x173   : > { %v5300_v46 = vpop.f32.mrf.mxu0 }
 0x174   : > { %v5302_v20 = vpop.f32.mrf.mxu1 }
 0x175   : > { %v5304_v48 = vpop.f32.mrf.mxu0 }
 0x176   : > { %v5306_v29 = vpop.f32.mrf.mxu1 }
 0x177   : > { %v5308_v63 = vpop.f32.mrf.mxu0 }
 0x178   : > { %v5310_v2 = vpop.f32.mrf.mxu1 }
 0x179   : > { %v5312_v53 = vpop.f32.mrf.mxu0 }
 0x17a   : > { %v5314_v33 = vpop.f32.mrf.mxu1 }
 0x17b   : > { %v5316_v17 = vpop.f32.mrf.mxu0 }
 0x17c   : > { %v5318_v58 = vpop.f32.mrf.mxu1 }
 0x17d   : > { %v5320_v0 = vpop.f32.mrf.mxu0 }
 0x17e   : > { %v5322_v60 = vpop.f32.mrf.mxu1 }
 0x17f   : > { %v5324_v11 = vpop.f32.mrf.mxu0 }
 0x180   : > { %v5326_v47 = vpop.f32.mrf.mxu1 }
 0x181   : > { %v5328_v27 = vpop.f32.mrf.mxu0 }
 0x182   : > { %v5330_v13 = vpop.f32.mrf.mxu1 }
 0x183   : > { %v5332_v35 = vpop.f32.mrf.mxu0 }
 0x184   : > { %5933 = vst [vmem:[#allocation14_spill] sm:$0xff] %v5332_v35  ;;  %v5334_v56 = vpop.f32.mrf.mxu1 }
 0x185   : > { %v5336_v43 = vpop.f32.mrf.mxu0 }
 0x186   : > { %5934 = vst [vmem:[#allocation15_spill] sm:$0xff] %v5336_v43  ;;  %v5338_v32 = vpop.f32.mrf.mxu1 }
 0x187   : > { %v5340_v19 = vpop.f32.mrf.mxu0 }
 0x188   : > { %5935 = vst [vmem:[#allocation16_spill] sm:$0xff] %v5340_v19  ;;  %v5342_v28 = vpop.f32.mrf.mxu1 }
 0x189   : > { %5936 = vst [vmem:[#allocation17_spill] sm:$0xff] %v5342_v28  ;;  %v5344_v36 = vpop.f32.mrf.mxu0 }
 0x18a   : > { %5937 = vst [vmem:[#allocation18_spill] sm:$0xff] %v5344_v36  ;;  %v5346_v50 = vpop.f32.mrf.mxu1 }
 0x18b   : > { %5938 = vst [vmem:[#allocation19_spill] sm:$0xff] %v5346_v50  ;;  %v5348_v61 = vpop.f32.mrf.mxu0 }
 0x18c   : > { %5939 = vst [vmem:[#allocation20_spill] sm:$0xff] %v5348_v61  ;;  %v5350_v15 = vpop.f32.mrf.mxu1 }
 0x18d   : > { %5940 = vst [vmem:[#allocation21_spill] sm:$0xff] %v5350_v15  ;;  %v5352_v18 = vpop.f32.mrf.mxu0 }
 0x18e   : > { %5941 = vst [vmem:[#allocation22_spill] sm:$0xff] %v5352_v18  ;;  %v5354_v5 = vpop.f32.mrf.mxu1  ;;  %v1928_v18 = vadd.f32 %v3897_v10, %v5199_v22 }
 0x18f   : > { %5942 = vst [vmem:[#allocation2_spill] sm:$0xff] %v5354_v5  ;;  %v5356_v25 = vpop.f32.mrf.mxu0 }
 0x190   : > { %5943 = vst [vmem:[#allocation4_spill] sm:$0xff] %v5356_v25  ;;  %v5358_v43 = vpop.f32.mrf.mxu1  ;;  %v1927_v25 = vadd.f32 %v1788_v55, %v5202_v6 }
 0x191   : > { %5944 = vst [vmem:[#allocation23_spill] sm:$0xff] %v5358_v43  ;;  %v5360_v19 = vpop.f32.mrf.mxu0 }
 0x192   : > { %5945 = vst [vmem:[#allocation24_spill] sm:$0xff] %v5360_v19  ;;  %v5362_v28 = vpop.f32.mrf.mxu1  ;;  %v2168_v35 = vadd.f32 %v2029_v40, %v1927_v25 }
 0x193   : > { %5946 = vst [vmem:[#allocation25_spill] sm:$0xff] %v5362_v28  ;;  %v5364_v36 = vpop.f32.mrf.mxu0 }
 0x194   : > { %5947 = vst [vmem:[#allocation26_spill] sm:$0xff] %v5364_v36  ;;  %v5366_v50 = vpop.f32.mrf.mxu1  ;;  %v2169_v36 = vadd.f32 %v3941_v16, %v1928_v18 }
 0x195   : > { %5948 = vst [vmem:[#allocation27_spill] sm:$0xff] %v5366_v50  ;;  %v5368_v61 = vpop.f32.mrf.mxu0  ;;  %v1930_v50 = vadd.f32 %v3900_v21, %v5205_v44  ;;  %v1932_v44 = vadd.f32 %v3903_v38, %v5211_v37 }
 0x196   : > { %5949 = vst [vmem:[#allocation28_spill] sm:$0xff] %v5368_v61  ;;  %v5370_v15 = vpop.f32.mrf.mxu1 }
 0x197   : > { %5950 = vst [vmem:[#allocation29_spill] sm:$0xff] %v5370_v15  ;;  %v5373_v14 = vpop.f32.mrf.mxu0  ;;  %v1929_v15 = vadd.f32 %v1798_v1, %v5208_v42  ;;  %v2171_v18 = vadd.f32 %v5282_v51, %v1930_v50  ;;  %v2173_v37 = vadd.f32 %v5286_v3, %v1932_v44  ;;  %v1935_v44 = vadd.f32 %v5306_v29, %v5226_v39 }
 0x198   : > { %v5375_v5 = vpop.f32.mrf.mxu1 }
 0x199   : > { %v5378_v43 = vpop.f32.mrf.mxu0 }
 0x19a   : > { %v5380_v19 = vpop.f32.mrf.mxu1 }
 0x19b   : > { %v4029_v28 = vpop.f32.mrf.mxu0 }
 0x19c   : > { %v3985_v61 = vpop.f32.mrf.mxu1 }
 0x19d   : > { %v2414_v22 = vadd.f32 %v3985_v61, %v2169_v36  ;;  %v2518_v10 = vpop.f32.mrf.mxu0  ;;  %v2170_v61 = vadd.f32 %v5284_v62, %v1929_v15  ;;  %v1931_v36 = vadd.f32 %v5290_v8, %v5214_v54  ;;  %v1933_v8 = vadd.f32 %v5298_v31, %v5220_v7 }
 0x19e   : > { %v2274_v6 = vpop.f32.mrf.mxu1 }
 0x19f   : > { %v5392_v16 = vadd.f32 %v4029_v28, %v2414_v22  ;;  %v2413_v25 = vadd.f32 %v2274_v6, %v2168_v35  ;;  %v4032_v40 = vpop.f32.mrf.mxu0  ;;  %v1934_v28 = vadd.f32 %v5294_v12, %v5217_v24  ;;  %v2172_v38 = vadd.f32 %v5288_v49, %v1931_v36 }
 0x1a0   : > { %v3988_v42 = vpop.f32.mrf.mxu1  ;;  %v2176_v36 = vadd.f32 %v5304_v48, %v1935_v44 }
 0x1a1   : > { %2687 = vst.msk [vmem:[%s5388_s13 + $0x8] sm:$0xff] %vm2685_vm4, %v5392_v16  ;;  %v5400_v55 = vadd.f32 %v2518_v10, %v2413_v25  ;;  %v2416_v21 = vadd.f32 %v3988_v42, %v2171_v18  ;;  %v2528_v50 = vpop.f32.mrf.mxu0  ;;  %v2175_v22 = vadd.f32 %v5292_v9, %v1934_v28  ;;  %v1936_v10 = vadd.f32 %v5302_v20, %v5223_v30 }
 0x1a2   : > { %v2284_v51 = vpop.f32.mrf.mxu1  ;;  %v2174_v18 = vadd.f32 %v5296_v4, %v1933_v8  ;;  %v1938_v42 = vadd.f32 %v5310_v2, %v5229_v45  ;;  %v1942_v8 = vadd.f32 %v5326_v47, %v5241_v34 }
 0x1a3   : > { %2686 = vst.msk [vmem:[%s5388_s13] sm:$0xff] %vm2685_vm4, %v5400_v55  ;;  %v5408_v15 = vadd.f32 %v4032_v40, %v2416_v21  ;;  %v2415_v54 = vadd.f32 %v2284_v51, %v2170_v61  ;;  %v4035_v62 = vpop.f32.mrf.mxu0  ;;  %v2177_v40 = vadd.f32 %v5300_v46, %v1936_v10  ;;  %v1937_v21 = vadd.f32 %v5314_v33, %v5232_v59 }
 0x1a4   : > { %v3991_v1 = vpop.f32.mrf.mxu1  ;;  %v2179_v51 = vadd.f32 %v5308_v63, %v1938_v42  ;;  %v2183_v10 = vadd.f32 %v5324_v11, %v1942_v8  ;;  %v5960_v8 = vld [vmem:[#allocation18_spill] sm:$0xff] }
 0x1a5   : > { %2689 = vst.msk [vmem:[%s5388_s13 + $0x18] sm:$0xff] %vm2685_vm4, %v5408_v15  ;;  %v5416_v3 = vadd.f32 %v2528_v50, %v2415_v54  ;;  %v2418_v24 = vadd.f32 %v3991_v1, %v2173_v37  ;;  %v2538_v12 = vpop.f32.mrf.mxu0  ;;  %v1940_v37 = vadd.f32 %v5318_v58, %v5235_v57  ;;  %v2178_v54 = vadd.f32 %v5312_v53, %v1937_v21  ;;  %v5956_v21 = vld [vmem:[#allocation19_spill] sm:$0xff] }
 0x1a6   : > { %v2294_v35 = vpop.f32.mrf.mxu1 }
 0x1a7   : > { %2688 = vst.msk [vmem:[%s5388_s13 + $0x10] sm:$0xff] %vm2685_vm4, %v5416_v3  ;;  %v5424_v49 = vadd.f32 %v4035_v62, %v2418_v24  ;;  %v2417_v7 = vadd.f32 %v2294_v35, %v2172_v38  ;;  %v4038_v31 = vpop.f32.mrf.mxu0  ;;  %v1939_v62 = vadd.f32 %v5322_v60, %v5238_v26  ;;  %v2181_v38 = vadd.f32 %v5316_v17, %v1940_v37 }
 0x1a8   : > { %v3994_v6 = vpop.f32.mrf.mxu1  ;;  %v1941_v35 = vadd.f32 %v5330_v13, %v5244_v41 }
 0x1a9   : > { %2691 = vst.msk [vmem:[%s5388_s13 + $0x28] sm:$0xff] %vm2685_vm4, %v5424_v49  ;;  %v5432_v9 = vadd.f32 %v2538_v12, %v2417_v7  ;;  %v2420_v30 = vadd.f32 %v3994_v6, %v2175_v22  ;;  %v2548_v20 = vpop.f32.mrf.mxu0  ;;  %v2180_v12 = vadd.f32 %v5320_v0, %v1939_v62  ;;  %v1944_v7 = vadd.f32 %v5334_v56, %v5247_v52 }
 0x1aa   : > { %v2304_v25 = vpop.f32.mrf.mxu1  ;;  %v2182_v6 = vadd.f32 %v5328_v27, %v1941_v35 }
 0x1ab   : > { %2690 = vst.msk [vmem:[%s5388_s13 + $0x20] sm:$0xff] %vm2685_vm4, %v5432_v9  ;;  %v5440_v4 = vadd.f32 %v4038_v31, %v2420_v30  ;;  %v2419_v39 = vadd.f32 %v2304_v25, %v2174_v18  ;;  %v4041_v29 = vpop.f32.mrf.mxu0  ;;  %v1943_v18 = vadd.f32 %v5338_v32, %v5250_v23  ;;  %v5951_v30 = vld [vmem:[#allocation14_spill] sm:$0xff]  ;;  %v5952_v25 = vld [vmem:[#allocation3_spill] sm:$0xff] }
 0x1ac   : > { %v3997_v61 = vpop.f32.mrf.mxu1 }
 0x1ad   : > { %2693 = vst.msk [vmem:[%s5388_s13 + $0x38] sm:$0xff] %vm2685_vm4, %v5440_v4  ;;  %v5448_v46 = vadd.f32 %v2548_v20, %v2419_v39  ;;  %v2422_v45 = vadd.f32 %v3997_v61, %v2177_v40  ;;  %v2558_v2 = vpop.f32.mrf.mxu0  ;;  %v2185_v20 = vadd.f32 %v5951_v30, %v1944_v7  ;;  %v5953_v40 = vld [vmem:[#allocation17_spill] sm:$0xff] }
 0x1ae   : > { %v2314_v50 = vpop.f32.mrf.mxu1  ;;  %v1946_v42 = vadd.f32 %v5953_v40, %v5952_v25  ;;  %v5968_v25 = vld [vmem:[#allocation25_spill] sm:$0xff] }
 0x1af   : > { %2692 = vst.msk [vmem:[%s5388_s13 + $0x30] sm:$0xff] %vm2685_vm4, %v5448_v46  ;;  %v5456_v48 = vadd.f32 %v4041_v29, %v2422_v45  ;;  %v2421_v59 = vadd.f32 %v2314_v50, %v2176_v36  ;;  %v4044_v33 = vpop.f32.mrf.mxu0  ;;  %v5954_v29 = vld [vmem:[#allocation15_spill] sm:$0xff]  ;;  %v5955_v36 = vld [vmem:[#allocation5_spill] sm:$0xff] }
 0x1b0   : > { %v4000_v28 = vpop.f32.mrf.mxu1  ;;  %v2184_v61 = vadd.f32 %v5954_v29, %v1943_v18  ;;  %v1945_v45 = vadd.f32 %v5956_v21, %v5955_v36  ;;  %v5969_v29 = vld [vmem:[#allocation4_spill] sm:$0xff]  ;;  %v5970_v36 = vld [vmem:[#allocation10_spill] sm:$0xff]  ;;  %v5971_v21 = vld [vmem:[#allocation27_spill] sm:$0xff] }
 0x1b1   : > { %2695 = vst.msk [vmem:[%s5388_s13 + $0x48] sm:$0xff] %vm2685_vm4, %v5456_v48  ;;  %v5464_v63 = vadd.f32 %v2558_v2, %v2421_v59  ;;  %v2424_v57 = vadd.f32 %v4000_v28, %v2179_v51  ;;  %v2568_v58 = vpop.f32.mrf.mxu0  ;;  %v5957_v59 = vld [vmem:[#allocation16_spill] sm:$0xff]  ;;  %v5958_v28 = vld [vmem:[#allocation6_spill] sm:$0xff] }
 0x1b2   : > { %v2324_v1 = vpop.f32.mrf.mxu1 }
 0x1b3   : > { %2694 = vst.msk [vmem:[%s5388_s13 + $0x40] sm:$0xff] %vm2685_vm4, %v5464_v63  ;;  %v5472_v53 = vadd.f32 %v4044_v33, %v2424_v57  ;;  %v2423_v26 = vadd.f32 %v2324_v1, %v2178_v54  ;;  %v4047_v60 = vpop.f32.mrf.mxu0  ;;  %v2187_v33 = vadd.f32 %v5957_v59, %v1946_v42  ;;  %v5959_v54 = vld [vmem:[#allocation21_spill] sm:$0xff] }
 0x1b4   : > { %v4003_v24 = vpop.f32.mrf.mxu1  ;;  %v1948_v62 = vadd.f32 %v5959_v54, %v5958_v28  ;;  %v5973_v54 = vld [vmem:[#allocation11_spill] sm:$0xff] }
 0x1b5   : > { %2697 = vst.msk [vmem:[%s5388_s13 + $0x58] sm:$0xff] %vm2685_vm4, %v5472_v53  ;;  %v5480_v17 = vadd.f32 %v2568_v58, %v2423_v26  ;;  %v2426_v34 = vadd.f32 %v4003_v24, %v2181_v38  ;;  %v2578_v47 = vpop.f32.mrf.mxu0  ;;  %v2186_v26 = vadd.f32 %v5960_v8, %v1945_v45  ;;  %v5962_v24 = vld [vmem:[#allocation2_spill] sm:$0xff]  ;;  %v1952_v45 = vadd.f32 %v5971_v21, %v5970_v36 }
 0x1b6   : > { %v2334_v22 = vpop.f32.mrf.mxu1 }
 0x1b7   : > { %2696 = vst.msk [vmem:[%s5388_s13 + $0x50] sm:$0xff] %vm2685_vm4, %v5480_v17  ;;  %v5488_v0 = vadd.f32 %v4047_v60, %v2426_v34  ;;  %v2425_v41 = vadd.f32 %v2334_v22, %v2180_v12  ;;  %v4050_v13 = vpop.f32.mrf.mxu0  ;;  %v5961_v60 = vld [vmem:[#allocation7_spill] sm:$0xff] }
 0x1b8   : > { %v4006_v31 = vpop.f32.mrf.mxu1  ;;  %v1947_v12 = vadd.f32 %v5962_v24, %v5961_v60  ;;  %v5975_v60 = vld [vmem:[#allocation26_spill] sm:$0xff] }
 0x1b9   : > { %2699 = vst.msk [vmem:[%s5388_s13 + $0x68] sm:$0xff] %vm2685_vm4, %v5488_v0  ;;  %v5496_v11 = vadd.f32 %v2578_v47, %v2425_v41  ;;  %v2428_v52 = vadd.f32 %v4006_v31, %v2183_v10  ;;  %v2588_v56 = vpop.f32.mrf.mxu0  ;;  %v5963_v10 = vld [vmem:[#allocation20_spill] sm:$0xff]  ;;  %v2193_v24 = vadd.f32 %v5975_v60, %v1952_v45 }
 0x1ba   : > { %v2344_v44 = vpop.f32.mrf.mxu1  ;;  %v2189_v7 = vadd.f32 %v5963_v10, %v1948_v62  ;;  %v5964_v41 = vld [vmem:[#allocation8_spill] sm:$0xff]  ;;  %v5974_v62 = vld [vmem:[#allocation29_spill] sm:$0xff] }
 0x1bb   : > { %2698 = vst.msk [vmem:[%s5388_s13 + $0x60] sm:$0xff] %vm2685_vm4, %v5496_v11  ;;  %v5504_v27 = vadd.f32 %v4050_v13, %v2428_v52  ;;  %v2427_v23 = vadd.f32 %v2344_v44, %v2182_v6  ;;  %v4053_v32 = vpop.f32.mrf.mxu0  ;;  %v5965_v13 = vld [vmem:[#allocation23_spill] sm:$0xff]  ;;  %v5966_v44 = vld [vmem:[#allocation22_spill] sm:$0xff] }
 0x1bc   : > { %v4009_v39 = vpop.f32.mrf.mxu1  ;;  %v1950_v31 = vadd.f32 %v5965_v13, %v5964_v41  ;;  %v2188_v30 = vadd.f32 %v5966_v44, %v1947_v12  ;;  %v5976_v12 = vld [vmem:[#allocation12_spill] sm:$0xff] }
 0x1bd   : > { %2701 = vst.msk [vmem:[%s5388_s13 + $0x78] sm:$0xff] %vm2685_vm4, %v5504_v27  ;;  %v5512_v2 = vadd.f32 %v2588_v56, %v2427_v23  ;;  %v2430_v50 = vadd.f32 %v4009_v39, %v2185_v20  ;;  %v2598_v51 = vpop.f32.mrf.mxu0  ;;  %v5967_v20 = vld [vmem:[#allocation9_spill] sm:$0xff]  ;;  %v5977_v41 = vld [vmem:[#allocation28_spill] sm:$0xff] }
 0x1be   : > { %v2354_v37 = vpop.f32.mrf.mxu1  ;;  %v1949_v40 = vadd.f32 %v5968_v25, %v5967_v20 }
 0x1bf   : > { %2700 = vst.msk [vmem:[%s5388_s13 + $0x70] sm:$0xff] %vm2685_vm4, %v5512_v2  ;;  %v5520_v57 = vadd.f32 %v4053_v32, %v2430_v50  ;;  %v2429_v58 = vadd.f32 %v2354_v37, %v2184_v61  ;;  %v4056_v1 = vpop.f32.mrf.mxu0  ;;  %v2191_v61 = vadd.f32 %v5969_v29, %v1950_v31  ;;  %v5978_v31 = vld [vmem:[#allocation13_spill] sm:$0xff] }
 0x1c0   : > { %v4012_v38 = vpop.f32.mrf.mxu1 }
 0x1c1   : > { %2703 = vst.msk [vmem:[%s5388_s13 + $0x88] sm:$0xff] %vm2685_vm4, %v5520_v57  ;;  %v5528_v35 = vadd.f32 %v2598_v51, %v2429_v58  ;;  %v2432_v34 = vadd.f32 %v4012_v38, %v2187_v33  ;;  %v2608_v47 = vpop.f32.mrf.mxu0  ;;  %v5972_v33 = vld [vmem:[#allocation24_spill] sm:$0xff]  ;;  %v1951_v58 = vadd.f32 %v5974_v62, %v5973_v54 }
 0x1c2   : > { %v2364_v22 = vpop.f32.mrf.mxu1  ;;  %v2190_v28 = vadd.f32 %v5972_v33, %v1949_v40 }
 0x1c3   : > { %2702 = vst.msk [vmem:[%s5388_s13 + $0x80] sm:$0xff] %vm2685_vm4, %v5528_v35  ;;  %v5536_v6 = vadd.f32 %v4056_v1, %v2432_v34  ;;  %v2431_v18 = vadd.f32 %v2364_v22, %v2186_v26  ;;  %v4059_v52 = vpop.f32.mrf.mxu0  ;;  %v1954_v34 = vadd.f32 %v5375_v5, %v5976_v12  ;;  %v2192_v13 = vadd.f32 %v5977_v41, %v1951_v58 }
 0x1c4   : > { %v4015_v56 = vpop.f32.mrf.mxu1 }
 0x1c5   : > { %2705 = vst.msk [vmem:[%s5388_s13 + $0x98] sm:$0xff] %vm2685_vm4, %v5536_v6  ;;  %v5544_v42 = vadd.f32 %v2608_v47, %v2431_v18  ;;  %v2434_v23 = vadd.f32 %v4015_v56, %v2189_v7  ;;  %v2618_v32 = vpop.f32.mrf.mxu0  ;;  %v1953_v18 = vadd.f32 %v5380_v19, %v5978_v31 }
 0x1c6   : > { %v2374_v39 = vpop.f32.mrf.mxu1 }
 0x1c7   : > { %2704 = vst.msk [vmem:[%s5388_s13 + $0x90] sm:$0xff] %vm2685_vm4, %v5544_v42  ;;  %v5552_v50 = vadd.f32 %v4059_v52, %v2434_v23  ;;  %v2433_v51 = vadd.f32 %v2374_v39, %v2188_v30  ;;  %v4062_v37 = vpop.f32.mrf.mxu0  ;;  %v2195_v30 = vadd.f32 %v5373_v14, %v1954_v34  ;;  %v2194_v23 = vadd.f32 %v5378_v43, %v1953_v18 }
 0x1c8   : > { %v4018_v59 = vpop.f32.mrf.mxu1 }
 0x1c9   : > { %2707 = vst.msk [vmem:[%s5388_s13 + $0xa8] sm:$0xff] %vm2685_vm4, %v5552_v50  ;;  %v5560_v1 = vadd.f32 %v2618_v32, %v2433_v51  ;;  %v2436_v38 = vadd.f32 %v4018_v59, %v2191_v61  ;;  %v2628_v8 = vpop.f32.mrf.mxu0 }
 0x1ca   : > { %v2384_v26 = vpop.f32.mrf.mxu1 }
 0x1cb   : > { %2706 = vst.msk [vmem:[%s5388_s13 + $0xa0] sm:$0xff] %vm2685_vm4, %v5560_v1  ;;  %v5568_v47 = vadd.f32 %v4062_v37, %v2436_v38  ;;  %v2435_v22 = vadd.f32 %v2384_v26, %v2190_v28  ;;  %v4065_v10 = vpop.f32.mrf.mxu0 }
 0x1cc   : > { %v4021_v7 = vpop.f32.mrf.mxu1 }
 0x1cd   : > { %2709 = vst.msk [vmem:[%s5388_s13 + $0xb8] sm:$0xff] %vm2685_vm4, %v5568_v47  ;;  %v5576_v52 = vadd.f32 %v2628_v8, %v2435_v22  ;;  %v2438_v5 = vadd.f32 %v4021_v7, %v2193_v24  ;;  %v2638_v56 = vpop.f32.mrf.mxu0 }
 0x1ce   : > { %v2394_v44 = vpop.f32.mrf.mxu1 }
 0x1cf   : > { %2708 = vst.msk [vmem:[%s5388_s13 + $0xb0] sm:$0xff] %vm2685_vm4, %v5576_v52  ;;  %v5582_v20 = vadd.f32 %v4065_v10, %v2438_v5  ;;  %v2437_v25 = vadd.f32 %v2394_v44, %v2192_v13  ;;  %v4068_v40 = vpop.f32.mrf.mxu0 }
 0x1d0   : > { %v4024_v19 = vpop.f32.mrf.mxu1 }
 0x1d1   : > { %2711 = vst.msk [vmem:[%s5388_s13 + $0xc8] sm:$0xff] %vm2685_vm4, %v5582_v20  ;;  %v5588_v32 = vadd.f32 %v2638_v56, %v2437_v25  ;;  %v2440_v39 = vadd.f32 %v4024_v19, %v2195_v30  ;;  %v2648_v36 = vpop.f32.mrf.mxu0 }
 0x1d2   : > { %v2404_v29 = vpop.f32.mrf.mxu1 }
 0x1d3   : > { %2710 = vst.msk [vmem:[%s5388_s13 + $0xc0] sm:$0xff] %vm2685_vm4, %v5588_v32  ;;  %v5593_v14 = vadd.f32 %v4068_v40, %v2440_v39  ;;  %v2439_v61 = vadd.f32 %v2404_v29, %v2194_v23  ;;  %2717 = sbr.rel (%p3409_p4) target bundleno = 474 (0x1da), region = 36 }
 0x1d5   : > { %2713 = vst.msk [vmem:[%s5388_s13 + $0xd8] sm:$0xff] %vm2685_vm4, %v5593_v14  ;;  %v5598_v21 = vadd.f32 %v2648_v36, %v2439_v61 }
 0x1d7   : > { %2712 = vst.msk [vmem:[%s5388_s13 + $0xd0] sm:$0xff] %vm2685_vm4, %v5598_v21 }
 0x1d8   : > { %vm2718_vm5 = vcmask 57344   ;;  %v4093_v43 = vmov 0.0  }
 0x1d9   : > { %2719 = vst.msk [vmem:[%s5825_s4] sm:$0x1] %vm2718_vm5, %v4093_v43  ;;  %2720 = vst.msk [vmem:[%s5826_s5] sm:$0x1] %vm2718_vm5, %v4093_v43 }
 0x1da PF: > { %v2723_v45 = vld [vmem:[%s5823_s2 + $0x10] sm:$0xff]  ;;  %v2721_v51 = vld [vmem:[%s5823_s2] sm:$0xff]  ;;  %v4094_v37 = vmov 0   ;;  %v2724_v59 = vld [vmem:[%s5823_s2 + $0x18] sm:$0xff]  ;;  %vm2980_vm6 = vcmask 57344  }
 0x1db   : > { %4084 = vset.pattern.permute.xlu1 %v4094_v37  ;;  %4083 = vset.pattern.permute.xlu0 %v4094_v37  ;;  %v2722_v33 = vld [vmem:[%s5823_s2 + $0x8] sm:$0xff]  ;;  %v2725_v54 = vld [vmem:[%s5823_s2 + $0x20] sm:$0xff]  ;;  %v2728_v62 = vld [vmem:[%s5823_s2 + $0x38] sm:$0xff] }
 0x1dc   : > { %2761 = vperm.xlu1 %4084, %v2723_v45   ;;  %2751 = vperm.xlu0 %4083, %v2721_v51   ;;  %v2726_v28 = vld [vmem:[%s5823_s2 + $0x28] sm:$0xff]  ;;  %v2727_v58 = vld [vmem:[%s5823_s2 + $0x30] sm:$0xff]  ;;  %v2729_v8 = vld [vmem:[%s5823_s2 + $0x40] sm:$0xff] }
 0x1dd   : > { %v2730_v38 = vld [vmem:[%s5823_s2 + $0x48] sm:$0xff]  ;;  %v2732_v26 = vld [vmem:[%s5823_s2 + $0x58] sm:$0xff]  ;;  %v2731_v60 = vld [vmem:[%s5823_s2 + $0x50] sm:$0xff] }
 0x1de   : > { %v2734_v24 = vld [vmem:[%s5823_s2 + $0x68] sm:$0xff]  ;;  %v2733_v12 = vld [vmem:[%s5823_s2 + $0x60] sm:$0xff]  ;;  %v2736_v34 = vld [vmem:[%s5823_s2 + $0x78] sm:$0xff] }
 0x1df   : > { %v2735_v22 = vld [vmem:[%s5823_s2 + $0x70] sm:$0xff]  ;;  %v2738_v10 = vld [vmem:[%s5823_s2 + $0x88] sm:$0xff]  ;;  %v2737_v7 = vld [vmem:[%s5823_s2 + $0x80] sm:$0xff] }
 0x1e0   : > { %2766 = vperm.xlu1 %4084, %v2724_v59   ;;  %2756 = vperm.xlu0 %4083, %v2722_v33   ;;  %v2740_v41 = vld [vmem:[%s5823_s2 + $0x98] sm:$0xff]  ;;  %v2739_v13 = vld [vmem:[%s5823_s2 + $0x90] sm:$0xff]  ;;  %v2742_v31 = vld [vmem:[%s5823_s2 + $0xa8] sm:$0xff] }
 0x1e1   : > { %v2741_v18 = vld [vmem:[%s5823_s2 + $0xa0] sm:$0xff]  ;;  %v2744_v5 = vld [vmem:[%s5823_s2 + $0xb8] sm:$0xff]  ;;  %v2743_v56 = vld [vmem:[%s5823_s2 + $0xb0] sm:$0xff] }
 0x1e2   : > { %v2746_v44 = vld [vmem:[%s5823_s2 + $0xc8] sm:$0xff]  ;;  %v2745_v30 = vld [vmem:[%s5823_s2 + $0xc0] sm:$0xff]  ;;  %v2748_v25 = vld [vmem:[%s5823_s2 + $0xd8] sm:$0xff] }
 0x1e3   : > { %v2747_v19 = vld [vmem:[%s5823_s2 + $0xd0] sm:$0xff] }
 0x1e4   : > { %2776 = vperm.xlu1 %4084, %v2726_v28   ;;  %2771 = vperm.xlu0 %4083, %v2725_v54  }
 0x1e8   : > { %2786 = vperm.xlu1 %4084, %v2728_v62   ;;  %2781 = vperm.xlu0 %4083, %v2727_v58  }
 0x1ec   : > { %2796 = vperm.xlu1 %4084, %v2730_v38   ;;  %2791 = vperm.xlu0 %4083, %v2729_v8  }
 0x1f0   : > { %2806 = vperm.xlu1 %4084, %v2732_v26   ;;  %2801 = vperm.xlu0 %4083, %v2731_v60  }
 0x1f4   : > { %2816 = vperm.xlu1 %4084, %v2734_v24   ;;  %2811 = vperm.xlu0 %4083, %v2733_v12  }
 0x1f8   : > { %2826 = vperm.xlu1 %4084, %v2736_v34   ;;  %2821 = vperm.xlu0 %4083, %v2735_v22  }
 0x1fc   : > { %2836 = vperm.xlu1 %4084, %v2738_v10   ;;  %2831 = vperm.xlu0 %4083, %v2737_v7  }
 0x200   : > { %2846 = vperm.xlu1 %4084, %v2740_v41   ;;  %2841 = vperm.xlu0 %4083, %v2739_v13  }
 0x204   : > { %2856 = vperm.xlu1 %4084, %v2742_v31   ;;  %2851 = vperm.xlu0 %4083, %v2741_v18  }
 0x208   : > { %2866 = vperm.xlu1 %4084, %v2744_v5   ;;  %2861 = vperm.xlu0 %4083, %v2743_v56  }
 0x20c   : > { %2876 = vperm.xlu1 %4084, %v2746_v44   ;;  %2871 = vperm.xlu0 %4083, %v2745_v30  }
 0x210   : > { %2886 = vperm.xlu1 %4084, %v2748_v25   ;;  %2881 = vperm.xlu0 %4083, %v2747_v19  }
 0x257   : > { %v2762_v40 = vpop.permute.xlu1 %2761  ;;  %v2752_v23 = vpop.permute.xlu0 %2751 }
 0x258   : > { %v2889_v39 = vmul.f32 %v2752_v23, %v5400_v55  ;;  %v2891_v29 = vmul.f32 %v2762_v40, %v5416_v3 }
 0x25a   : > { %v2983_v43 = vmul.f32 %v2889_v39, %v5400_v55  ;;  %v2985_v37 = vmul.f32 %v2891_v29, %v5416_v3  ;;  %v2918_v59 = vsel %vm2685_vm4, %v2889_v39, 0.0  ;;  %v2921_v54 = vsel %vm2685_vm4, %v2891_v29, 0.0 }
 0x25b   : > { %v2767_v61 = vpop.permute.xlu1 %2766  ;;  %v2757_v36 = vpop.permute.xlu0 %2756 }
 0x25c   : > { %v2892_v45 = vmul.f32 %v2767_v61, %v5408_v15  ;;  %v2890_v51 = vmul.f32 %v2757_v36, %v5392_v16  ;;  %v3011_v55 = vsel %vm2685_vm4, %v2983_v43, 0.0  ;;  %v3014_v34 = vsel %vm2685_vm4, %v2985_v37, 0.0 }
 0x25e   : > { %v2919_v33 = vsel %vm2685_vm4, %v2890_v51, 0.0  ;;  %v2984_v28 = vmul.f32 %v2890_v51, %v5392_v16  ;;  %v2986_v62 = vmul.f32 %v2892_v45, %v5408_v15  ;;  %v2923_v16 = vsel %vm2685_vm4, %v2892_v45, 0.0 }
 0x25f   : > { %v2920_v58 = vadd.f32 %v2919_v33, %v2918_v59  ;;  %v2777_v38 = vpop.permute.xlu1 %2776  ;;  %v2772_v8 = vpop.permute.xlu0 %2771 }
 0x260   : > { %v3012_v26 = vsel %vm2685_vm4, %v2984_v28, 0.0  ;;  %v2894_v60 = vmul.f32 %v2777_v38, %v5424_v49  ;;  %v2893_v3 = vmul.f32 %v2772_v8, %v5432_v9  ;;  %v3016_v15 = vsel %vm2685_vm4, %v2986_v62, 0.0 }
 0x261   : > { %v2922_v24 = vadd.f32 %v2921_v54, %v2920_v58  ;;  %v3013_v12 = vadd.f32 %v3012_v26, %v3011_v55 }
 0x262   : > { %v2987_v22 = vmul.f32 %v2893_v3, %v5432_v9  ;;  %v2988_v31 = vmul.f32 %v2894_v60, %v5424_v49  ;;  %v2925_v18 = vsel %vm2685_vm4, %v2893_v3, 0.0  ;;  %v2927_v25 = vsel %vm2685_vm4, %v2894_v60, 0.0 }
 0x263   : > { %v3015_v10 = vadd.f32 %v3014_v34, %v3013_v12  ;;  %v2924_v7 = vadd.f32 %v2923_v16, %v2922_v24  ;;  %v2787_v41 = vpop.permute.xlu1 %2786  ;;  %v2782_v13 = vpop.permute.xlu0 %2781 }
 0x264   : > { %v2896_v5 = vmul.f32 %v2787_v41, %v5440_v4  ;;  %v2895_v56 = vmul.f32 %v2782_v13, %v5448_v46  ;;  %v3018_v9 = vsel %vm2685_vm4, %v2987_v22, 0.0  ;;  %v3020_v61 = vsel %vm2685_vm4, %v2988_v31, 0.0 }
 0x265   : > { %v3017_v44 = vadd.f32 %v3016_v15, %v3015_v10  ;;  %v2926_v30 = vadd.f32 %v2925_v18, %v2924_v7 }
 0x266   : > { %v2989_v19 = vmul.f32 %v2895_v56, %v5448_v46  ;;  %v2990_v23 = vmul.f32 %v2896_v5, %v5440_v4  ;;  %v2929_v36 = vsel %vm2685_vm4, %v2895_v56, 0.0  ;;  %v2931_v59 = vsel %vm2685_vm4, %v2896_v5, 0.0 }
 0x267   : > { %v3019_v40 = vadd.f32 %v3018_v9, %v3017_v44  ;;  %v2928_v39 = vadd.f32 %v2927_v25, %v2926_v30  ;;  %v2797_v29 = vpop.permute.xlu1 %2796  ;;  %v2792_v49 = vpop.permute.xlu0 %2791 }
 0x268   : > { %v2898_v43 = vmul.f32 %v2797_v29, %v5456_v48  ;;  %v2897_v45 = vmul.f32 %v2792_v49, %v5464_v63  ;;  %v3022_v46 = vsel %vm2685_vm4, %v2989_v19, 0.0  ;;  %v3024_v4 = vsel %vm2685_vm4, %v2990_v23, 0.0 }
 0x269   : > { %v3021_v51 = vadd.f32 %v3020_v61, %v3019_v40  ;;  %v2930_v37 = vadd.f32 %v2929_v36, %v2928_v39 }
 0x26a   : > { %v2991_v33 = vmul.f32 %v2897_v45, %v5464_v63  ;;  %v2992_v38 = vmul.f32 %v2898_v43, %v5456_v48  ;;  %v2933_v8 = vsel %vm2685_vm4, %v2897_v45, 0.0  ;;  %v2935_v24 = vsel %vm2685_vm4, %v2898_v43, 0.0 }
 0x26b   : > { %v3023_v28 = vadd.f32 %v3022_v46, %v3021_v51  ;;  %v2932_v54 = vadd.f32 %v2931_v59, %v2930_v37  ;;  %v2807_v62 = vpop.permute.xlu1 %2806  ;;  %v2802_v58 = vpop.permute.xlu0 %2801 }
 0x26c   : > { %v2900_v55 = vmul.f32 %v2807_v62, %v5472_v53  ;;  %v2899_v26 = vmul.f32 %v2802_v58, %v5480_v17  ;;  %v3026_v63 = vsel %vm2685_vm4, %v2991_v33, 0.0  ;;  %v3028_v10 = vsel %vm2685_vm4, %v2992_v38, 0.0 }
 0x26d   : > { %v3025_v60 = vadd.f32 %v3024_v4, %v3023_v28  ;;  %v2934_v3 = vadd.f32 %v2933_v8, %v2932_v54 }
 0x26e   : > { %v2993_v12 = vmul.f32 %v2899_v26, %v5480_v17  ;;  %v2994_v16 = vmul.f32 %v2900_v55, %v5472_v53  ;;  %v2937_v7 = vsel %vm2685_vm4, %v2899_v26, 0.0  ;;  %v2939_v5 = vsel %vm2685_vm4, %v2900_v55, 0.0 }
 0x26f   : > { %v3027_v34 = vadd.f32 %v3026_v63, %v3025_v60  ;;  %v2936_v22 = vadd.f32 %v2935_v24, %v2934_v3  ;;  %v2817_v15 = vpop.permute.xlu1 %2816  ;;  %v2812_v48 = vpop.permute.xlu0 %2811 }
 0x270   : > { %v2902_v41 = vmul.f32 %v2817_v15, %v5488_v0  ;;  %v2901_v13 = vmul.f32 %v2812_v48, %v5496_v11  ;;  %v3030_v17 = vsel %vm2685_vm4, %v2993_v12, 0.0  ;;  %v3032_v53 = vsel %vm2685_vm4, %v2994_v16, 0.0 }
 0x271   : > { %v3029_v31 = vadd.f32 %v3028_v10, %v3027_v34  ;;  %v2938_v18 = vadd.f32 %v2937_v7, %v2936_v22 }
 0x272   : > { %v2995_v56 = vmul.f32 %v2901_v13, %v5496_v11  ;;  %v2996_v19 = vmul.f32 %v2902_v41, %v5488_v0  ;;  %v2941_v40 = vsel %vm2685_vm4, %v2901_v13, 0.0  ;;  %v2943_v61 = vsel %vm2685_vm4, %v2902_v41, 0.0 }
 0x273   : > { %v3031_v44 = vadd.f32 %v3030_v17, %v3029_v31  ;;  %v2940_v30 = vadd.f32 %v2939_v5, %v2938_v18  ;;  %v2827_v25 = vpop.permute.xlu1 %2826  ;;  %v2822_v9 = vpop.permute.xlu0 %2821 }
 0x274   : > { %v2904_v23 = vmul.f32 %v2827_v25, %v5504_v27  ;;  %v2903_v39 = vmul.f32 %v2822_v9, %v5512_v2  ;;  %v3034_v11 = vsel %vm2685_vm4, %v2995_v56, 0.0  ;;  %v3036_v59 = vsel %vm2685_vm4, %v2996_v19, 0.0 }
 0x275   : > { %v3033_v29 = vadd.f32 %v3032_v53, %v3031_v44  ;;  %v2942_v49 = vadd.f32 %v2941_v40, %v2940_v30 }
 0x276   : > { %v2997_v36 = vmul.f32 %v2903_v39, %v5512_v2  ;;  %v2998_v45 = vmul.f32 %v2904_v23, %v5504_v27  ;;  %v2945_v46 = vsel %vm2685_vm4, %v2903_v39, 0.0  ;;  %v2947_v62 = vsel %vm2685_vm4, %v2904_v23, 0.0 }
 0x277   : > { %v3035_v43 = vadd.f32 %v3034_v11, %v3033_v29  ;;  %v2944_v51 = vadd.f32 %v2943_v61, %v2942_v49  ;;  %v2837_v37 = vpop.permute.xlu1 %2836  ;;  %v2832_v0 = vpop.permute.xlu0 %2831 }
 0x278   : > { %v2906_v33 = vmul.f32 %v2837_v37, %v5520_v57  ;;  %v2905_v4 = vmul.f32 %v2832_v0, %v5528_v35  ;;  %v3038_v2 = vsel %vm2685_vm4, %v2997_v36, 0.0  ;;  %v3040_v27 = vsel %vm2685_vm4, %v2998_v45, 0.0 }
 0x279   : > { %v3037_v28 = vadd.f32 %v3036_v59, %v3035_v43  ;;  %v2946_v54 = vadd.f32 %v2945_v46, %v2944_v51 }
 0x27a   : > { %v2999_v58 = vmul.f32 %v2905_v4, %v5528_v35  ;;  %v3000_v60 = vmul.f32 %v2906_v33, %v5520_v57  ;;  %v2949_v3 = vsel %vm2685_vm4, %v2905_v4, 0.0  ;;  %v2951_v16 = vsel %vm2685_vm4, %v2906_v33, 0.0 }
 0x27b   : > { %v3039_v38 = vadd.f32 %v3038_v2, %v3037_v28  ;;  %v2948_v8 = vadd.f32 %v2947_v62, %v2946_v54  ;;  %v2847_v55 = vpop.permute.xlu1 %2846  ;;  %v2842_v26 = vpop.permute.xlu0 %2841 }
 0x27c   : > { %v2908_v24 = vmul.f32 %v2847_v55, %v5536_v6  ;;  %v2907_v63 = vmul.f32 %v2842_v26, %v5544_v42  ;;  %v3042_v35 = vsel %vm2685_vm4, %v2999_v58, 0.0  ;;  %v3044_v41 = vsel %vm2685_vm4, %v3000_v60, 0.0 }
 0x27d   : > { %v3041_v12 = vadd.f32 %v3040_v27, %v3039_v38  ;;  %v2950_v34 = vadd.f32 %v2949_v3, %v2948_v8 }
 0x27e   : > { %v3001_v22 = vmul.f32 %v2907_v63, %v5544_v42  ;;  %v3002_v48 = vmul.f32 %v2908_v24, %v5536_v6  ;;  %v2953_v13 = vsel %vm2685_vm4, %v2907_v63, 0.0  ;;  %v2955_v56 = vsel %vm2685_vm4, %v2908_v24, 0.0 }
 0x27f   : > { %v3043_v15 = vadd.f32 %v3042_v35, %v3041_v12  ;;  %v2952_v10 = vadd.f32 %v2951_v16, %v2950_v34  ;;  %v2857_v7 = vpop.permute.xlu1 %2856  ;;  %v2852_v57 = vpop.permute.xlu0 %2851 }
 0x280   : > { %v2910_v31 = vmul.f32 %v2857_v7, %v5552_v50  ;;  %v2909_v18 = vmul.f32 %v2852_v57, %v5560_v1  ;;  %v3046_v42 = vsel %vm2685_vm4, %v3001_v22, 0.0  ;;  %v3048_v6 = vsel %vm2685_vm4, %v3002_v48, 0.0 }
 0x281   : > { %v3045_v5 = vadd.f32 %v3044_v41, %v3043_v15  ;;  %v2954_v17 = vadd.f32 %v2953_v13, %v2952_v10 }
 0x282   : > { %v3003_v53 = vmul.f32 %v2909_v18, %v5560_v1  ;;  %v3004_v19 = vmul.f32 %v2910_v31, %v5552_v50  ;;  %v2957_v40 = vsel %vm2685_vm4, %v2909_v18, 0.0  ;;  %v2959_v61 = vsel %vm2685_vm4, %v2910_v31, 0.0 }
 0x283   : > { %v3047_v44 = vadd.f32 %v3046_v42, %v3045_v5  ;;  %v2956_v30 = vadd.f32 %v2955_v56, %v2954_v17  ;;  %v2867_v25 = vpop.permute.xlu1 %2866  ;;  %v2862_v9 = vpop.permute.xlu0 %2861 }
 0x284   : > { %v2912_v23 = vmul.f32 %v2867_v25, %v5568_v47  ;;  %v2911_v39 = vmul.f32 %v2862_v9, %v5576_v52  ;;  %v3050_v1 = vsel %vm2685_vm4, %v3003_v53, 0.0  ;;  %v3052_v37 = vsel %vm2685_vm4, %v3004_v19, 0.0  ;;  %v2982_v25 = vld [vmem:[%s5826_s5] sm:$0x1] }
 0x285   : > { %v3049_v29 = vadd.f32 %v3048_v6, %v3047_v44  ;;  %v2958_v49 = vadd.f32 %v2957_v40, %v2956_v30  ;;  %v2917_v6 = vld [vmem:[%s5825_s4] sm:$0x1] }
 0x286   : > { %v3005_v11 = vmul.f32 %v2911_v39, %v5576_v52  ;;  %v3006_v43 = vmul.f32 %v2912_v23, %v5568_v47  ;;  %v2961_v0 = vsel %vm2685_vm4, %v2911_v39, 0.0  ;;  %v2963_v28 = vsel %vm2685_vm4, %v2912_v23, 0.0 }
 0x287   : > { %v3051_v36 = vadd.f32 %v3050_v1, %v3049_v29  ;;  %v2960_v45 = vadd.f32 %v2959_v61, %v2958_v49  ;;  %v2877_v51 = vpop.permute.xlu1 %2876  ;;  %v2872_v50 = vpop.permute.xlu0 %2871 }
 0x288   : > { %v2914_v59 = vmul.f32 %v2877_v51, %v5582_v20  ;;  %v2913_v46 = vmul.f32 %v2872_v50, %v5588_v32  ;;  %v3054_v52 = vsel %vm2685_vm4, %v3005_v11, 0.0  ;;  %v3056_v47 = vsel %vm2685_vm4, %v3006_v43, 0.0 }
 0x289   : > { %v3053_v33 = vadd.f32 %v3052_v37, %v3051_v36  ;;  %v2962_v4 = vadd.f32 %v2961_v0, %v2960_v45 }
 0x28a   : > { %v3007_v54 = vmul.f32 %v2913_v46, %v5588_v32  ;;  %v3008_v38 = vmul.f32 %v2914_v59, %v5582_v20  ;;  %v2965_v8 = vsel %vm2685_vm4, %v2913_v46, 0.0  ;;  %v2967_v24 = vsel %vm2685_vm4, %v2914_v59, 0.0 }
 0x28b   : > { %v3055_v62 = vadd.f32 %v3054_v52, %v3053_v33  ;;  %v2964_v2 = vadd.f32 %v2963_v28, %v2962_v4  ;;  %v2887_v58 = vpop.permute.xlu1 %2886  ;;  %v2882_v27 = vpop.permute.xlu0 %2881 }
 0x28c   : > { %v2916_v55 = vmul.f32 %v2887_v58, %v5593_v14  ;;  %v2915_v26 = vmul.f32 %v2882_v27, %v5598_v21  ;;  %v3058_v32 = vsel %vm2685_vm4, %v3007_v54, 0.0  ;;  %v3060_v16 = vsel %vm2685_vm4, %v3008_v38, 0.0 }
 0x28d   : > { %v3057_v60 = vadd.f32 %v3056_v47, %v3055_v62  ;;  %v2966_v3 = vadd.f32 %v2965_v8, %v2964_v2 }
 0x28e   : > { %v3009_v63 = vmul.f32 %v2915_v26, %v5598_v21  ;;  %v3010_v20 = vmul.f32 %v2916_v55, %v5593_v14  ;;  %v2969_v35 = vsel %vm2685_vm4, %v2915_v26, 0.0  ;;  %v2971_v48 = vsel %vm2685_vm4, %v2916_v55, 0.0 }
 0x28f   : > { %v3059_v12 = vadd.f32 %v3058_v32, %v3057_v60  ;;  %v2968_v34 = vadd.f32 %v2967_v24, %v2966_v3 }
 0x290   : > { %v3062_v10 = vsel %vm2685_vm4, %v3009_v63, 0.0  ;;  %v3064_v41 = vsel %vm2685_vm4, %v3010_v20, 0.0 }
 0x291   : > { %v3061_v22 = vadd.f32 %v3060_v16, %v3059_v12  ;;  %v2970_v15 = vadd.f32 %v2969_v35, %v2968_v34 }
 0x293   : > { %v2972_v7 = vadd.f32 %v2971_v48, %v2970_v15  ;;  %v3063_v57 = vadd.f32 %v3062_v10, %v3061_v22 }
 0x295   : > { %v2973_v13 = vrot.slane %v2972_v7, 4  ;;  %v3065_v21 = vadd.f32 %v3064_v41, %v3063_v57 }
 0x297   : > { %v2974_v31 = vadd.f32 %v2973_v13, %v2972_v7  ;;  %v3066_v18 = vrot.slane %v3065_v21, 4 }
 0x299   : > { %v2975_v5 = vrot.slane %v2974_v31, 2  ;;  %v3067_v17 = vadd.f32 %v3066_v18, %v3065_v21 }
 0x29b   : > { %v2976_v56 = vadd.f32 %v2975_v5, %v2974_v31  ;;  %v3068_v14 = vrot.slane %v3067_v17, 2 }
 0x29d   : > { %v2977_v42 = vrot.slane %v2976_v56, 1  ;;  %v3069_v53 = vadd.f32 %v3068_v14, %v3067_v17 }
 0x29f   : > { %v2978_v44 = vadd.f32 %v2977_v42, %v2976_v56  ;;  %v3070_v30 = vrot.slane %v3069_v53, 1 }
 0x2a1   : > { %v2979_v9 = vadd.f32 %v2978_v44, %v2917_v6  ;;  %v3071_v19 = vadd.f32 %v3070_v30, %v3069_v53 }
 0x2a3   : > { %2981 = vst.msk [vmem:[%s5825_s4] sm:$0x1] %vm2980_vm6, %v2979_v9  ;;  %v3072_v40 = vadd.f32 %v3071_v19, %v2982_v25 }
 0x2a5   : > { %3073 = vst.msk [vmem:[%s5826_s5] sm:$0x1] %vm2980_vm6, %v3072_v40 }
 0x2a6 PF: > { %s16_s18 = sadd.s32 1, %s4091_s18  }
 0x2a7   : > { %p13_p5 = scmp.ge.s32.totalorder %s16_s18, 4  }
 0x2a9   :  { %15 = sbr.rel (!%p13_p5) target bundleno = 1 (0x1), region = 82 }

</bundles_post_ra>
